<compile_context>
chip_gen: v5e
topology: v5e:2x2
jax: 0.10.0
libtpu: 0.0.40
codegen_flags: <defaults>
</compile_context>

<pallas_src>
import jax
import jax.numpy as jnp
from jax.experimental import pallas as pl
from jax.experimental.pallas import tpu as pltpu


# --------------------------------------------------------------------------- #
# Kernel A: stream A and the channel-major edge attrs over a (d, s) grid,
#           accumulate per-destination aggregates (d on lanes), finalize
#           h_ego / h_peer per d-block.  h_eagg is output-resident.
# --------------------------------------------------------------------------- #
def _cane_edge_stream_kernel(a_ref, ea_ref, xT_ref,
                             w_egoT_ref, b_ego_ref, w_pxT_ref, w_peT_ref, b_peer_ref,
                             w_edge_ref, b_edge_ref,
                             eaggT_ref, egoT_ref, peerT_ref,
                             deg_ref, mea_ref):
    si = pl.program_id(1)
    edge_dim = ea_ref.shape[0]
    edge_hidden = eaggT_ref.shape[0]
    f32 = jnp.float32

    @pl.when(si == 0)
    def _init():
        eaggT_ref[...] = jnp.zeros_like(eaggT_ref)
        deg_ref[...] = jnp.zeros_like(deg_ref)
        mea_ref[...] = jnp.zeros_like(mea_ref)

    a_bin = (a_ref[...] != 0.0).astype(f32)                # (TS, TD), dest on lanes
    eas = [ea_ref[c] for c in range(edge_dim)]             # each (TS, TD)

    # degree and masked edge-attr aggregation, per destination (d on lanes)
    deg_ref[...] += jnp.sum(a_bin, axis=0, keepdims=True)                   # (1, TD)
    for c in range(edge_dim):
        mea_ref[c:c + 1, :] += jnp.sum(a_bin * eas[c], axis=0, keepdims=True)

    # per-edge masked-relu edge embedding, aggregated over sources (VPU + XLU):
    #   h_eagg[h, d] += sum_s A[s,d] * relu(sum_c ea[c,s,d]*W_edge[c,h] + b_edge[h])
    for h in range(edge_hidden):
        z = eas[0] * w_edge_ref[0, h]
        for c in range(1, edge_dim):
            z = z + eas[c] * w_edge_ref[c, h]
        z = z + b_edge_ref[0, h]
        eaggT_ref[h:h + 1, :] += jnp.sum(a_bin * jnp.maximum(z, 0.0),
                                         axis=0, keepdims=True)

    @pl.when(si == pl.num_programs(1) - 1)
    def _finalize():
        deg = deg_ref[...]                                  # (1, TD)
        dinv = jnp.where(deg > 0.0, jax.lax.rsqrt(deg), 0.0)
        xT = xT_ref[...]                                    # (Dn, TD)

        # h_ego^T = relu(W_ego^T @ x^T + b_ego)
        egoT_ref[...] = jnp.maximum(
            jnp.dot(w_egoT_ref[...], xT, preferred_element_type=f32)
            + b_ego_ref[...], 0.0)

        # sum_s A*(cat(x[d],ea)@W_peer + b_peer)
        #   = deg*(W_px^T x^T + b_peer) + W_pe^T (sum_s A*ea)
        xw = jnp.dot(w_pxT_ref[...], xT, preferred_element_type=f32)          # (Hpe, TD)
        pe = jnp.dot(w_peT_ref[...], mea_ref[...], preferred_element_type=f32)
        peerT_ref[...] = jnp.maximum(
            dinv * (deg * (xw + b_peer_ref[...]) + pe), 0.0)


# --------------------------------------------------------------------------- #
# Kernel B: second hop  h_enrm^T = dinv * (h_eagg^T @ A)   (needs global h_eagg)
# --------------------------------------------------------------------------- #
def _cane_second_hop_kernel(a_ref, eaggT_ref, enrmT_ref, deg_ref):
    si = pl.program_id(1)
    f32 = jnp.float32

    @pl.when(si == 0)
    def _init():
        enrmT_ref[...] = jnp.zeros_like(enrmT_ref)
        deg_ref[...] = jnp.zeros_like(deg_ref)

    a_bin = (a_ref[...] != 0.0).astype(f32)                 # (TS, TD)
    deg_ref[...] += jnp.sum(a_bin, axis=0, keepdims=True)
    enrmT_ref[...] += jnp.dot(eaggT_ref[...], a_bin, preferred_element_type=f32)

    @pl.when(si == pl.num_programs(1) - 1)
    def _finalize():
        deg = deg_ref[...]
        dinv = jnp.where(deg > 0.0, jax.lax.rsqrt(deg), 0.0)
        enrmT_ref[...] = enrmT_ref[...] * dinv


def init_params(key, node_dim, node_hidden, edge_dim, edge_hidden):
    ego_hidden = node_hidden // 2
    peer_hidden = node_hidden - ego_hidden
    ks = jax.random.split(key, 6)
    return {
        "W_ego": 0.1 * jax.random.normal(ks[0], (node_dim, ego_hidden), jnp.float32),
        "b_ego": 0.1 * jax.random.normal(ks[1], (1, ego_hidden), jnp.float32),
        "W_peer": 0.1 * jax.random.normal(
            ks[2], (node_dim + edge_dim, peer_hidden + edge_hidden), jnp.float32),
        "b_peer": 0.1 * jax.random.normal(ks[3], (1, peer_hidden + edge_hidden),
                                          jnp.float32),
        "W_edge": 0.1 * jax.random.normal(ks[4], (edge_dim, edge_hidden), jnp.float32),
        "b_edge": 0.1 * jax.random.normal(ks[5], (1, edge_hidden), jnp.float32),
    }


def cane_feature_embedding(x, A, edge_attrs_cm, params, node_hidden, edge_hidden,
                           *, d_block=None, s_block=None):
    """x: [N, node_dim], A: [N, N] (nonzero = edge),
    edge_attrs_cm: [edge_dim, N, N] dense edge attributes, channel-major
    (ea[c, s, d] is channel c of edge s -> d)."""
    N, node_dim = x.shape
    edge_dim = edge_attrs_cm.shape[0]
    assert edge_attrs_cm.shape == (edge_dim, N, N)
    assert edge_dim >= 1 and edge_hidden >= 1 and node_hidden >= 2
    ego_hidden = node_hidden // 2
    peer_hidden = node_hidden - ego_hidden
    peer_width = peer_hidden + edge_hidden
    f32 = jnp.float32

    # node blocks: lane-dim blocks must be multiples of 128 (or the full N)
    if d_block is None:
        d_block = 256 if N % 256 == 0 else (128 if N % 128 == 0 else N)
    if s_block is None:
        s_block = 256 if N % 256 == 0 else (128 if N % 128 == 0 else N)
    assert N % d_block == 0 and (d_block % 128 == 0 or d_block == N)
    assert N % s_block == 0 and (s_block % 128 == 0 or s_block == N)
    n_d = N // d_block
    n_s = N // s_block

    # ---- glue (plain JAX): tiny weight re-layouts only; no O(N^2) work here ----
    A_f = A.astype(f32)
    ea_f = edge_attrs_cm.astype(f32)
    xT = x.astype(f32).T                                           # (Dn, N)
    w_egoT = jnp.asarray(params["W_ego"], f32).T                   # (Hego, Dn)
    b_ego_col = jnp.asarray(params["b_ego"], f32).T                # (Hego, 1)
    w_pxT = jnp.asarray(params["W_peer"], f32)[:node_dim].T        # (Hpe, Dn)
    w_peT = jnp.asarray(params["W_peer"], f32)[node_dim:].T        # (Hpe, De)
    b_peer_col = jnp.asarray(params["b_peer"], f32).T              # (Hpe, 1)
    w_edge = jnp.asarray(params["W_edge"], f32)                    # (De, He) -> SMEM
    b_edge = jnp.asarray(params["b_edge"], f32)                    # (1, He)  -> SMEM

    cost = pl.CostEstimate(
        flops=int(N * N * (edge_hidden * (2 * edge_dim + 3) + 3 * edge_dim + 2)
                  + 2 * N * (node_dim * (ego_hidden + peer_width)
                             + edge_dim * peer_width)),
        transcendentals=int(N),
        bytes_accessed=int(4 * (N * N * (edge_dim + 1) + N * node_dim
                                + N * (edge_hidden + ego_hidden + peer_width))))

    h_eaggT, h_egoT, h_peerT = pl.pallas_call(
        _cane_edge_stream_kernel,
        out_shape=(
            jax.ShapeDtypeStruct((edge_hidden, N), f32),   # h_eagg^T
            jax.ShapeDtypeStruct((ego_hidden, N), f32),    # h_ego^T
            jax.ShapeDtypeStruct((peer_width, N), f32),    # h_peer^T
        ),
        grid=(n_d, n_s),
        in_specs=[
            pl.BlockSpec((s_block, d_block), lambda di, si: (si, di)),            # A
            pl.BlockSpec((edge_dim, s_block, d_block), lambda di, si: (0, si, di)),  # ea
            pl.BlockSpec((node_dim, d_block), lambda di, si: (0, di)),            # x^T
            pl.BlockSpec((ego_hidden, node_dim), lambda di, si: (0, 0)),          # W_ego^T
            pl.BlockSpec((ego_hidden, 1), lambda di, si: (0, 0)),                 # b_ego
            pl.BlockSpec((peer_width, node_dim), lambda di, si: (0, 0)),          # W_px^T
            pl.BlockSpec((peer_width, edge_dim), lambda di, si: (0, 0)),          # W_pe^T
            pl.BlockSpec((peer_width, 1), lambda di, si: (0, 0)),                 # b_peer
            pl.BlockSpec(memory_space=pltpu.MemorySpace.SMEM),                    # W_edge
            pl.BlockSpec(memory_space=pltpu.MemorySpace.SMEM),                    # b_edge
        ],
        out_specs=(
            pl.BlockSpec((edge_hidden, d_block), lambda di, si: (0, di)),
            pl.BlockSpec((ego_hidden, d_block), lambda di, si: (0, di)),
            pl.BlockSpec((peer_width, d_block), lambda di, si: (0, di)),
        ),
        scratch_shapes=[pltpu.VMEM((1, d_block), f32),          # deg
                        pltpu.VMEM((edge_dim, d_block), f32)],  # sum_s A*ea
        compiler_params=pltpu.CompilerParams(
            dimension_semantics=("parallel", "arbitrary")),
        cost_estimate=cost,
    )(A_f, ea_f, xT, w_egoT, b_ego_col, w_pxT, w_peT, b_peer_col, w_edge, b_edge)

    # second hop needs the fully aggregated h_eagg, so it is a separate tiled pass.
    h_enrmT = pl.pallas_call(
        _cane_second_hop_kernel,
        out_shape=jax.ShapeDtypeStruct((edge_hidden, N), f32),
        grid=(n_d, n_s),
        in_specs=[
            pl.BlockSpec((s_block, d_block), lambda di, si: (si, di)),       # A
            pl.BlockSpec((edge_hidden, s_block), lambda di, si: (0, si)),    # h_eagg^T
        ],
        out_specs=pl.BlockSpec((edge_hidden, d_block), lambda di, si: (0, di)),
        scratch_shapes=[pltpu.VMEM((1, d_block), f32)],
        compiler_params=pltpu.CompilerParams(
            dimension_semantics=("parallel", "arbitrary")),
    )(A_f, h_eaggT)

    # assemble [h_ego, h_eagg, h_enrm, h_peer]  (tiny O(N*hidden) transposes)
    return jnp.concatenate(
        [h_egoT.T, h_eaggT.T, h_enrmT.T, h_peerT.T], axis=1)


def reference(x, A, edge_attrs_cm, params):
    """Pure-JAX dense reference of the intended torch forward (f32, highest precision)."""
    HI = jax.lax.Precision.HIGHEST
    N, node_dim = x.shape
    Ab = (A != 0).astype(jnp.float32)
    deg = jnp.sum(Ab, axis=0)                              # deg[d] = sum_s A[s,d]
    dinv = jnp.where(deg > 0, deg ** -0.5, 0.0)
    h_ego = jax.nn.relu(jnp.dot(x, params["W_ego"], precision=HI) + params["b_ego"])
    ea = jnp.transpose(edge_attrs_cm, (1, 2, 0))           # (s, d, De)
    pf = jnp.concatenate(
        [jnp.broadcast_to(x[None, :, :], (N, N, node_dim)), ea], axis=-1)
    peer_lin = jnp.einsum("sdi,ih->sdh", pf, params["W_peer"],
                          precision=HI) + params["b_peer"]
    h_peer = jax.nn.relu(dinv[:, None]
                         * jnp.einsum("sd,sdh->dh", Ab, peer_lin, precision=HI))
    edge_lin = jax.nn.relu(jnp.einsum("sdc,ch->sdh", ea, params["W_edge"],
                                      precision=HI) + params["b_edge"])
    h_eagg = jnp.einsum("sd,sdh->dh", Ab, edge_lin, precision=HI)
    h_enrm = dinv[:, None] * jnp.dot(Ab.T, h_eagg, precision=HI)
    return jnp.concatenate([h_ego, h_eagg, h_enrm, h_peer], axis=1)


if __name__ == "__main__":
    # small synthetic shapes consistent with the module; 2x2 grid of 128-node tiles
    N = 256
    node_dim = 6
    node_hidden = 8      # ego_hidden = 4, peer_hidden = 4
    edge_dim = 3
    edge_hidden = 4

    key = jax.random.PRNGKey(0)
    kx, ka, ke, kp = jax.random.split(key, 4)

    x = jax.random.normal(kx, (N, node_dim), jnp.float32)
    A = jax.random.bernoulli(ka, 0.1, (N, N)).astype(jnp.float32)
    A = A * (1.0 - jnp.eye(N, dtype=jnp.float32))          # no self-loops
    # dense channel-major edge attributes; zero where there is no edge
    edge_attrs_cm = A[None, :, :] * jax.random.normal(
        ke, (edge_dim, N, N), jnp.float32)

    params = init_params(kp, node_dim, node_hidden, edge_dim, edge_hidden)

    out = cane_feature_embedding(x, A, edge_attrs_cm, params,
                                 node_hidden, edge_hidden,
                                 d_block=128, s_block=128)
    out = jax.block_until_ready(out)

    ref = reference(x, A, edge_attrs_cm, params)
    assert out.shape == (N, node_hidden + 3 * edge_hidden), out.shape
    max_err = float(jnp.max(jnp.abs(out - ref)))
    assert jnp.allclose(out, ref, atol=2e-4, rtol=2e-4), max_err

    print("KERNEL_OK")
</pallas_src>

<mosaic_0001>
module attributes {stable_mosaic.version = 11 : i64} {
  func.func @_cane_edge_stream_kernel(%arg0: i32, %arg1: i32, %arg2: memref<128x128xf32, #tpu.memory_space<vmem>>, %arg3: memref<3x128x128xf32, #tpu.memory_space<vmem>>, %arg4: memref<6x128xf32, #tpu.memory_space<vmem>>, %arg5: memref<4x6xf32, #tpu.memory_space<vmem>>, %arg6: memref<4x1xf32, #tpu.memory_space<vmem>>, %arg7: memref<8x6xf32, #tpu.memory_space<vmem>>, %arg8: memref<8x3xf32, #tpu.memory_space<vmem>>, %arg9: memref<8x1xf32, #tpu.memory_space<vmem>>, %arg10: memref<3x4xf32, #tpu.memory_space<smem>>, %arg11: memref<1x4xf32, #tpu.memory_space<smem>>, %arg12: memref<4x128xf32, #tpu.memory_space<vmem>>, %arg13: memref<4x128xf32, #tpu.memory_space<vmem>>, %arg14: memref<8x128xf32, #tpu.memory_space<vmem>>, %arg15: memref<1x128xf32, #tpu.memory_space<vmem>>, %arg16: memref<3x128xf32, #tpu.memory_space<vmem>>) attributes {dimension_semantics = [#tpu.dimension_semantics<parallel>, #tpu.dimension_semantics<arbitrary>], iteration_bounds = array<i64: 2, 2>, scalar_prefetch = 0 : i64, scratch_operands = 2 : i64, tpu.core_type = #tpu.core_type<tc>, window_params = [{transform_indices = @transform_0, window_bounds = array<i64: 128, 128>}, {transform_indices = @transform_1, window_bounds = array<i64: 3, 128, 128>}, {transform_indices = @transform_2, window_bounds = array<i64: 6, 128>}, {pipeline_mode = #tpu.pipeline_mode<synchronous>, transform_indices = @transform_3, window_bounds = array<i64: 4, 6>}, {pipeline_mode = #tpu.pipeline_mode<synchronous>, transform_indices = @transform_4, window_bounds = array<i64: 4, 1>}, {pipeline_mode = #tpu.pipeline_mode<synchronous>, transform_indices = @transform_5, window_bounds = array<i64: 8, 6>}, {pipeline_mode = #tpu.pipeline_mode<synchronous>, transform_indices = @transform_6, window_bounds = array<i64: 8, 3>}, {pipeline_mode = #tpu.pipeline_mode<synchronous>, transform_indices = @transform_7, window_bounds = array<i64: 8, 1>}, {transform_indices = @transform_8, window_bounds = array<i64: 3, 4>}, {transform_indices = @transform_9, window_bounds = array<i64: 1, 4>}, {transform_indices = @transform_10, window_bounds = array<i64: 4, 128>}, {transform_indices = @transform_11, window_bounds = array<i64: 4, 128>}, {transform_indices = @transform_12, window_bounds = array<i64: 8, 128>}]} {
    %c0_i32 = arith.constant 0 : i32
    %0 = arith.cmpi eq, %arg1, %c0_i32 : i32
    %1 = arith.extui %0 : i1 to i32
    %c0_i32_0 = arith.constant 0 : i32
    %2 = arith.cmpi ne, %1, %c0_i32_0 : i32
    scf.if %2 {
      %cst_85 = arith.constant 0.000000e+00 : f32
      %128 = vector.broadcast %cst_85 : f32 to vector<4x128xf32>
      %c0_86 = arith.constant 0 : index
      %c0_87 = arith.constant 0 : index
      %129 = vector.load %arg12[%c0_86, %c0_87] : memref<4x128xf32, #tpu.memory_space<vmem>>, vector<4x128xf32>
      tpu.vector_store %arg12[%c0_86, %c0_87], %128 {strides = array<i32>} : memref<4x128xf32, #tpu.memory_space<vmem>>, vector<4x128xf32>,
      %cst_88 = arith.constant 0.000000e+00 : f32
      %130 = vector.broadcast %cst_88 : f32 to vector<1x128xf32>
      %c0_89 = arith.constant 0 : index
      %c0_90 = arith.constant 0 : index
      %131 = vector.load %arg15[%c0_89, %c0_90] : memref<1x128xf32, #tpu.memory_space<vmem>>, vector<1x128xf32>
      tpu.vector_store %arg15[%c0_89, %c0_90], %130 {strides = array<i32>} : memref<1x128xf32, #tpu.memory_space<vmem>>, vector<1x128xf32>,
      %cst_91 = arith.constant 0.000000e+00 : f32
      %132 = vector.broadcast %cst_91 : f32 to vector<3x128xf32>
      %c0_92 = arith.constant 0 : index
      %c0_93 = arith.constant 0 : index
      %133 = vector.load %arg16[%c0_92, %c0_93] : memref<3x128xf32, #tpu.memory_space<vmem>>, vector<3x128xf32>
      tpu.vector_store %arg16[%c0_92, %c0_93], %132 {strides = array<i32>} : memref<3x128xf32, #tpu.memory_space<vmem>>, vector<3x128xf32>,
    } else {
    }
    %c0 = arith.constant 0 : index
    %c0_1 = arith.constant 0 : index
    %3 = vector.load %arg2[%c0, %c0_1] : memref<128x128xf32, #tpu.memory_space<vmem>>, vector<128x128xf32>
    %cst = arith.constant 0.000000e+00 : f32
    %4 = vector.broadcast %cst : f32 to vector<128x128xf32>
    %5 = arith.cmpf one, %3, %4 : vector<128x128xf32>
    %6 = arith.extui %5 : vector<128x128xi1> to vector<128x128xi32>
    %7 = arith.sitofp %6 : vector<128x128xi32> to vector<128x128xf32>
    %c0_2 = arith.constant 0 : index
    %c0_3 = arith.constant 0 : index
    %c0_4 = arith.constant 0 : index
    %8 = vector.load %arg3[%c0_2, %c0_3, %c0_4] : memref<3x128x128xf32, #tpu.memory_space<vmem>>, vector<1x128x128xf32>
    %9 = vector.shape_cast %8 : vector<1x128x128xf32> to vector<128x128xf32>
    %c1 = arith.constant 1 : index
    %c0_5 = arith.constant 0 : index
    %c0_6 = arith.constant 0 : index
    %10 = vector.load %arg3[%c1, %c0_5, %c0_6] : memref<3x128x128xf32, #tpu.memory_space<vmem>>, vector<1x128x128xf32>
    %11 = vector.shape_cast %10 : vector<1x128x128xf32> to vector<128x128xf32>
    %c2 = arith.constant 2 : index
    %c0_7 = arith.constant 0 : index
    %c0_8 = arith.constant 0 : index
    %12 = vector.load %arg3[%c2, %c0_7, %c0_8] : memref<3x128x128xf32, #tpu.memory_space<vmem>>, vector<1x128x128xf32>
    %13 = vector.shape_cast %12 : vector<1x128x128xf32> to vector<128x128xf32>
    %c0_9 = arith.constant 0 : index
    %c0_10 = arith.constant 0 : index
    %14 = vector.load %arg15[%c0_9, %c0_10] : memref<1x128xf32, #tpu.memory_space<vmem>>, vector<1x128xf32>
    %cst_11 = arith.constant dense<0.000000e+00> : vector<128xf32>
    %15 = vector.multi_reduction <add>, %7, %cst_11 [0] : vector<128x128xf32> to vector<128xf32>
    %16 = vector.shape_cast %15 : vector<128xf32> to vector<1x128xf32>
    %17 = arith.addf %14, %16 : vector<1x128xf32>
    %c0_12 = arith.constant 0 : index
    %c0_13 = arith.constant 0 : index
    %18 = vector.load %arg15[%c0_12, %c0_13] : memref<1x128xf32, #tpu.memory_space<vmem>>, vector<1x128xf32>
    tpu.vector_store %arg15[%c0_12, %c0_13], %17 {strides = array<i32>} : memref<1x128xf32, #tpu.memory_space<vmem>>, vector<1x128xf32>,
    %c0_14 = arith.constant 0 : index
    %c0_15 = arith.constant 0 : index
    %19 = vector.load %arg16[%c0_14, %c0_15] : memref<3x128xf32, #tpu.memory_space<vmem>>, vector<1x128xf32>
    %20 = arith.mulf %7, %9 : vector<128x128xf32>
    %cst_16 = arith.constant dense<0.000000e+00> : vector<128xf32>
    %21 = vector.multi_reduction <add>, %20, %cst_16 [0] : vector<128x128xf32> to vector<128xf32>
    %22 = vector.shape_cast %21 : vector<128xf32> to vector<1x128xf32>
    %23 = arith.addf %19, %22 : vector<1x128xf32>
    %c0_17 = arith.constant 0 : index
    %c0_18 = arith.constant 0 : index
    %24 = vector.load %arg16[%c0_17, %c0_18] : memref<3x128xf32, #tpu.memory_space<vmem>>, vector<1x128xf32>
    tpu.vector_store %arg16[%c0_17, %c0_18], %23 {strides = array<i32>} : memref<3x128xf32, #tpu.memory_space<vmem>>, vector<1x128xf32>,
    %c1_19 = arith.constant 1 : index
    %c0_20 = arith.constant 0 : index
    %25 = vector.load %arg16[%c1_19, %c0_20] : memref<3x128xf32, #tpu.memory_space<vmem>>, vector<1x128xf32>
    %26 = arith.mulf %7, %11 : vector<128x128xf32>
    %cst_21 = arith.constant dense<0.000000e+00> : vector<128xf32>
    %27 = vector.multi_reduction <add>, %26, %cst_21 [0] : vector<128x128xf32> to vector<128xf32>
    %28 = vector.shape_cast %27 : vector<128xf32> to vector<1x128xf32>
    %29 = arith.addf %25, %28 : vector<1x128xf32>
    %c1_22 = arith.constant 1 : index
    %c0_23 = arith.constant 0 : index
    %30 = vector.load %arg16[%c1_22, %c0_23] : memref<3x128xf32, #tpu.memory_space<vmem>>, vector<1x128xf32>
    tpu.vector_store %arg16[%c1_22, %c0_23], %29 {strides = array<i32>} : memref<3x128xf32, #tpu.memory_space<vmem>>, vector<1x128xf32>,
    %c2_24 = arith.constant 2 : index
    %c0_25 = arith.constant 0 : index
    %31 = vector.load %arg16[%c2_24, %c0_25] : memref<3x128xf32, #tpu.memory_space<vmem>>, vector<1x128xf32>
    %32 = arith.mulf %7, %13 : vector<128x128xf32>
    %cst_26 = arith.constant dense<0.000000e+00> : vector<128xf32>
    %33 = vector.multi_reduction <add>, %32, %cst_26 [0] : vector<128x128xf32> to vector<128xf32>
    %34 = vector.shape_cast %33 : vector<128xf32> to vector<1x128xf32>
    %35 = arith.addf %31, %34 : vector<1x128xf32>
    %c2_27 = arith.constant 2 : index
    %c0_28 = arith.constant 0 : index
    %36 = vector.load %arg16[%c2_27, %c0_28] : memref<3x128xf32, #tpu.memory_space<vmem>>, vector<1x128xf32>
    tpu.vector_store %arg16[%c2_27, %c0_28], %35 {strides = array<i32>} : memref<3x128xf32, #tpu.memory_space<vmem>>, vector<1x128xf32>,
    %c0_29 = arith.constant 0 : index
    %c0_30 = arith.constant 0 : index
    %37 = memref.load %arg10[%c0_29, %c0_30] : memref<3x4xf32, #tpu.memory_space<smem>>
    %38 = vector.broadcast %37 : f32 to vector<128x128xf32>
    %39 = arith.mulf %9, %38 : vector<128x128xf32>
    %c1_31 = arith.constant 1 : index
    %c0_32 = arith.constant 0 : index
    %40 = memref.load %arg10[%c1_31, %c0_32] : memref<3x4xf32, #tpu.memory_space<smem>>
    %41 = vector.broadcast %40 : f32 to vector<128x128xf32>
    %42 = arith.mulf %11, %41 : vector<128x128xf32>
    %43 = arith.addf %39, %42 : vector<128x128xf32>
    %c2_33 = arith.constant 2 : index
    %c0_34 = arith.constant 0 : index
    %44 = memref.load %arg10[%c2_33, %c0_34] : memref<3x4xf32, #tpu.memory_space<smem>>
    %45 = vector.broadcast %44 : f32 to vector<128x128xf32>
    %46 = arith.mulf %13, %45 : vector<128x128xf32>
    %47 = arith.addf %43, %46 : vector<128x128xf32>
    %c0_35 = arith.constant 0 : index
    %c0_36 = arith.constant 0 : index
    %48 = memref.load %arg11[%c0_35, %c0_36] : memref<1x4xf32, #tpu.memory_space<smem>>
    %49 = vector.broadcast %48 : f32 to vector<128x128xf32>
    %50 = arith.addf %47, %49 : vector<128x128xf32>
    %c0_37 = arith.constant 0 : index
    %c0_38 = arith.constant 0 : index
    %51 = vector.load %arg12[%c0_37, %c0_38] : memref<4x128xf32, #tpu.memory_space<vmem>>, vector<1x128xf32>
    %cst_39 = arith.constant 0.000000e+00 : f32
    %52 = vector.broadcast %cst_39 : f32 to vector<128x128xf32>
    %53 = arith.maximumf %50, %52 : vector<128x128xf32>
    %54 = arith.mulf %7, %53 : vector<128x128xf32>
    %cst_40 = arith.constant dense<0.000000e+00> : vector<128xf32>
    %55 = vector.multi_reduction <add>, %54, %cst_40 [0] : vector<128x128xf32> to vector<128xf32>
    %56 = vector.shape_cast %55 : vector<128xf32> to vector<1x128xf32>
    %57 = arith.addf %51, %56 : vector<1x128xf32>
    %c0_41 = arith.constant 0 : index
    %c0_42 = arith.constant 0 : index
    %58 = vector.load %arg12[%c0_41, %c0_42] : memref<4x128xf32, #tpu.memory_space<vmem>>, vector<1x128xf32>
    tpu.vector_store %arg12[%c0_41, %c0_42], %57 {strides = array<i32>} : memref<4x128xf32, #tpu.memory_space<vmem>>, vector<1x128xf32>,
    %c0_43 = arith.constant 0 : index
    %c1_44 = arith.constant 1 : index
    %59 = memref.load %arg10[%c0_43, %c1_44] : memref<3x4xf32, #tpu.memory_space<smem>>
    %60 = vector.broadcast %59 : f32 to vector<128x128xf32>
    %61 = arith.mulf %9, %60 : vector<128x128xf32>
    %c1_45 = arith.constant 1 : index
    %c1_46 = arith.constant 1 : index
    %62 = memref.load %arg10[%c1_45, %c1_46] : memref<3x4xf32, #tpu.memory_space<smem>>
    %63 = vector.broadcast %62 : f32 to vector<128x128xf32>
    %64 = arith.mulf %11, %63 : vector<128x128xf32>
    %65 = arith.addf %61, %64 : vector<128x128xf32>
    %c2_47 = arith.constant 2 : index
    %c1_48 = arith.constant 1 : index
    %66 = memref.load %arg10[%c2_47, %c1_48] : memref<3x4xf32, #tpu.memory_space<smem>>
    %67 = vector.broadcast %66 : f32 to vector<128x128xf32>
    %68 = arith.mulf %13, %67 : vector<128x128xf32>
    %69 = arith.addf %65, %68 : vector<128x128xf32>
    %c0_49 = arith.constant 0 : index
    %c1_50 = arith.constant 1 : index
    %70 = memref.load %arg11[%c0_49, %c1_50] : memref<1x4xf32, #tpu.memory_space<smem>>
    %71 = vector.broadcast %70 : f32 to vector<128x128xf32>
    %72 = arith.addf %69, %71 : vector<128x128xf32>
    %c1_51 = arith.constant 1 : index
    %c0_52 = arith.constant 0 : index
    %73 = vector.load %arg12[%c1_51, %c0_52] : memref<4x128xf32, #tpu.memory_space<vmem>>, vector<1x128xf32>
    %cst_53 = arith.constant 0.000000e+00 : f32
    %74 = vector.broadcast %cst_53 : f32 to vector<128x128xf32>
    %75 = arith.maximumf %72, %74 : vector<128x128xf32>
    %76 = arith.mulf %7, %75 : vector<128x128xf32>
    %cst_54 = arith.constant dense<0.000000e+00> : vector<128xf32>
    %77 = vector.multi_reduction <add>, %76, %cst_54 [0] : vector<128x128xf32> to vector<128xf32>
    %78 = vector.shape_cast %77 : vector<128xf32> to vector<1x128xf32>
    %79 = arith.addf %73, %78 : vector<1x128xf32>
    %c1_55 = arith.constant 1 : index
    %c0_56 = arith.constant 0 : index
    %80 = vector.load %arg12[%c1_55, %c0_56] : memref<4x128xf32, #tpu.memory_space<vmem>>, vector<1x128xf32>
    tpu.vector_store %arg12[%c1_55, %c0_56], %79 {strides = array<i32>} : memref<4x128xf32, #tpu.memory_space<vmem>>, vector<1x128xf32>,
    %c0_57 = arith.constant 0 : index
    %c2_58 = arith.constant 2 : index
    %81 = memref.load %arg10[%c0_57, %c2_58] : memref<3x4xf32, #tpu.memory_space<smem>>
    %82 = vector.broadcast %81 : f32 to vector<128x128xf32>
    %83 = arith.mulf %9, %82 : vector<128x128xf32>
    %c1_59 = arith.constant 1 : index
    %c2_60 = arith.constant 2 : index
    %84 = memref.load %arg10[%c1_59, %c2_60] : memref<3x4xf32, #tpu.memory_space<smem>>
    %85 = vector.broadcast %84 : f32 to vector<128x128xf32>
    %86 = arith.mulf %11, %85 : vector<128x128xf32>
    %87 = arith.addf %83, %86 : vector<128x128xf32>
    %c2_61 = arith.constant 2 : index
    %c2_62 = arith.constant 2 : index
    %88 = memref.load %arg10[%c2_61, %c2_62] : memref<3x4xf32, #tpu.memory_space<smem>>
    %89 = vector.broadcast %88 : f32 to vector<128x128xf32>
    %90 = arith.mulf %13, %89 : vector<128x128xf32>
    %91 = arith.addf %87, %90 : vector<128x128xf32>
    %c0_63 = arith.constant 0 : index
    %c2_64 = arith.constant 2 : index
    %92 = memref.load %arg11[%c0_63, %c2_64] : memref<1x4xf32, #tpu.memory_space<smem>>
    %93 = vector.broadcast %92 : f32 to vector<128x128xf32>
    %94 = arith.addf %91, %93 : vector<128x128xf32>
    %c2_65 = arith.constant 2 : index
    %c0_66 = arith.constant 0 : index
    %95 = vector.load %arg12[%c2_65, %c0_66] : memref<4x128xf32, #tpu.memory_space<vmem>>, vector<1x128xf32>
    %cst_67 = arith.constant 0.000000e+00 : f32
    %96 = vector.broadcast %cst_67 : f32 to vector<128x128xf32>
    %97 = arith.maximumf %94, %96 : vector<128x128xf32>
    %98 = arith.mulf %7, %97 : vector<128x128xf32>
    %cst_68 = arith.constant dense<0.000000e+00> : vector<128xf32>
    %99 = vector.multi_reduction <add>, %98, %cst_68 [0] : vector<128x128xf32> to vector<128xf32>
    %100 = vector.shape_cast %99 : vector<128xf32> to vector<1x128xf32>
    %101 = arith.addf %95, %100 : vector<1x128xf32>
    %c2_69 = arith.constant 2 : index
    %c0_70 = arith.constant 0 : index
    %102 = vector.load %arg12[%c2_69, %c0_70] : memref<4x128xf32, #tpu.memory_space<vmem>>, vector<1x128xf32>
    tpu.vector_store %arg12[%c2_69, %c0_70], %101 {strides = array<i32>} : memref<4x128xf32, #tpu.memory_space<vmem>>, vector<1x128xf32>,
    %c0_71 = arith.constant 0 : index
    %c3 = arith.constant 3 : index
    %103 = memref.load %arg10[%c0_71, %c3] : memref<3x4xf32, #tpu.memory_space<smem>>
    %104 = vector.broadcast %103 : f32 to vector<128x128xf32>
    %105 = arith.mulf %9, %104 : vector<128x128xf32>
    %c1_72 = arith.constant 1 : index
    %c3_73 = arith.constant 3 : index
    %106 = memref.load %arg10[%c1_72, %c3_73] : memref<3x4xf32, #tpu.memory_space<smem>>
    %107 = vector.broadcast %106 : f32 to vector<128x128xf32>
    %108 = arith.mulf %11, %107 : vector<128x128xf32>
    %109 = arith.addf %105, %108 : vector<128x128xf32>
    %c2_74 = arith.constant 2 : index
    %c3_75 = arith.constant 3 : index
    %110 = memref.load %arg10[%c2_74, %c3_75] : memref<3x4xf32, #tpu.memory_space<smem>>
    %111 = vector.broadcast %110 : f32 to vector<128x128xf32>
    %112 = arith.mulf %13, %111 : vector<128x128xf32>
    %113 = arith.addf %109, %112 : vector<128x128xf32>
    %c0_76 = arith.constant 0 : index
    %c3_77 = arith.constant 3 : index
    %114 = memref.load %arg11[%c0_76, %c3_77] : memref<1x4xf32, #tpu.memory_space<smem>>
    %115 = vector.broadcast %114 : f32 to vector<128x128xf32>
    %116 = arith.addf %113, %115 : vector<128x128xf32>
    %c3_78 = arith.constant 3 : index
    %c0_79 = arith.constant 0 : index
    %117 = vector.load %arg12[%c3_78, %c0_79] : memref<4x128xf32, #tpu.memory_space<vmem>>, vector<1x128xf32>
    %cst_80 = arith.constant 0.000000e+00 : f32
    %118 = vector.broadcast %cst_80 : f32 to vector<128x128xf32>
    %119 = arith.maximumf %116, %118 : vector<128x128xf32>
    %120 = arith.mulf %7, %119 : vector<128x128xf32>
    %cst_81 = arith.constant dense<0.000000e+00> : vector<128xf32>
    %121 = vector.multi_reduction <add>, %120, %cst_81 [0] : vector<128x128xf32> to vector<128xf32>
    %122 = vector.shape_cast %121 : vector<128xf32> to vector<1x128xf32>
    %123 = arith.addf %117, %122 : vector<1x128xf32>
    %c3_82 = arith.constant 3 : index
    %c0_83 = arith.constant 0 : index
    %124 = vector.load %arg12[%c3_82, %c0_83] : memref<4x128xf32, #tpu.memory_space<vmem>>, vector<1x128xf32>
    tpu.vector_store %arg12[%c3_82, %c0_83], %123 {strides = array<i32>} : memref<4x128xf32, #tpu.memory_space<vmem>>, vector<1x128xf32>,
    %c1_i32 = arith.constant 1 : i32
    %125 = arith.cmpi eq, %arg1, %c1_i32 : i32
    %126 = arith.extui %125 : i1 to i32
    %c0_i32_84 = arith.constant 0 : i32
    %127 = arith.cmpi ne, %126, %c0_i32_84 : i32
    scf.if %127 {
      %c0_85 = arith.constant 0 : index
      %c0_86 = arith.constant 0 : index
      %128 = vector.load %arg15[%c0_85, %c0_86] : memref<1x128xf32, #tpu.memory_space<vmem>>, vector<1x128xf32>
      %cst_87 = arith.constant 0.000000e+00 : f32
      %129 = vector.broadcast %cst_87 : f32 to vector<1x128xf32>
      %130 = arith.cmpf ogt, %128, %129 : vector<1x128xf32>
      %131 = math.rsqrt %128 : vector<1x128xf32>
      %cst_88 = arith.constant 0.000000e+00 : f32
      %132 = vector.broadcast %cst_88 : f32 to vector<1x128xf32>
      %133 = arith.select %130, %131, %132 : vector<1x128xi1>, vector<1x128xf32>
      %c0_89 = arith.constant 0 : index
      %c0_90 = arith.constant 0 : index
      %134 = vector.load %arg4[%c0_89, %c0_90] : memref<6x128xf32, #tpu.memory_space<vmem>>, vector<6x128xf32>
      %c0_91 = arith.constant 0 : index
      %c0_92 = arith.constant 0 : index
      %135 = vector.load %arg5[%c0_91, %c0_92] : memref<4x6xf32, #tpu.memory_space<vmem>>, vector<4x6xf32>
      %cst_93 = arith.constant dense<0.000000e+00> : vector<4x128xf32>
      %136 = tpu.matmul %135, %134, %cst_93 {dimension_numbers = #tpu.dot_dimension_numbers<[1], [0], [0], [1], [0, 0, 1, 1], [], []>} : vector<4x6xf32>, vector<6x128xf32>, vector<4x128xf32> -> vector<4x128xf32>
      %c0_94 = arith.constant 0 : index
      %c0_95 = arith.constant 0 : index
      %137 = vector.load %arg6[%c0_94, %c0_95] : memref<4x1xf32, #tpu.memory_space<vmem>>, vector<4x1xf32>
      %138 = vector.broadcast %137 : vector<4x1xf32> to vector<4x128xf32>
      %139 = arith.addf %136, %138 : vector<4x128xf32>
      %cst_96 = arith.constant 0.000000e+00 : f32
      %140 = vector.broadcast %cst_96 : f32 to vector<4x128xf32>
      %141 = arith.maximumf %139, %140 : vector<4x128xf32>
      %c0_97 = arith.constant 0 : index
      %c0_98 = arith.constant 0 : index
      %142 = vector.load %arg13[%c0_97, %c0_98] : memref<4x128xf32, #tpu.memory_space<vmem>>, vector<4x128xf32>
      tpu.vector_store %arg13[%c0_97, %c0_98], %141 {strides = array<i32>} : memref<4x128xf32, #tpu.memory_space<vmem>>, vector<4x128xf32>,
      %c0_99 = arith.constant 0 : index
      %c0_100 = arith.constant 0 : index
      %143 = vector.load %arg7[%c0_99, %c0_100] : memref<8x6xf32, #tpu.memory_space<vmem>>, vector<8x6xf32>
      %cst_101 = arith.constant dense<0.000000e+00> : vector<8x128xf32>
      %144 = tpu.matmul %143, %134, %cst_101 {dimension_numbers = #tpu.dot_dimension_numbers<[1], [0], [0], [1], [0, 0, 1, 1], [], []>} : vector<8x6xf32>, vector<6x128xf32>, vector<8x128xf32> -> vector<8x128xf32>
      %c0_102 = arith.constant 0 : index
      %c0_103 = arith.constant 0 : index
      %145 = vector.load %arg8[%c0_102, %c0_103] : memref<8x3xf32, #tpu.memory_space<vmem>>, vector<8x3xf32>
      %c0_104 = arith.constant 0 : index
      %c0_105 = arith.constant 0 : index
      %146 = vector.load %arg16[%c0_104, %c0_105] : memref<3x128xf32, #tpu.memory_space<vmem>>, vector<3x128xf32>
      %cst_106 = arith.constant dense<0.000000e+00> : vector<8x128xf32>
      %147 = tpu.matmul %145, %146, %cst_106 {dimension_numbers = #tpu.dot_dimension_numbers<[1], [0], [0], [1], [0, 0, 1, 1], [], []>} : vector<8x3xf32>, vector<3x128xf32>, vector<8x128xf32> -> vector<8x128xf32>
      %c0_107 = arith.constant 0 : index
      %c0_108 = arith.constant 0 : index
      %148 = vector.load %arg9[%c0_107, %c0_108] : memref<8x1xf32, #tpu.memory_space<vmem>>, vector<8x1xf32>
      %149 = vector.broadcast %148 : vector<8x1xf32> to vector<8x128xf32>
      %150 = arith.addf %144, %149 : vector<8x128xf32>
      %151 = vector.broadcast %128 : vector<1x128xf32> to vector<8x128xf32>
      %152 = arith.mulf %151, %150 : vector<8x128xf32>
      %153 = arith.addf %152, %147 : vector<8x128xf32>
      %154 = vector.broadcast %133 : vector<1x128xf32> to vector<8x128xf32>
      %155 = arith.mulf %154, %153 : vector<8x128xf32>
      %cst_109 = arith.constant 0.000000e+00 : f32
      %156 = vector.broadcast %cst_109 : f32 to vector<8x128xf32>
      %157 = arith.maximumf %155, %156 : vector<8x128xf32>
      %c0_110 = arith.constant 0 : index
      %c0_111 = arith.constant 0 : index
      %158 = vector.load %arg14[%c0_110, %c0_111] : memref<8x128xf32, #tpu.memory_space<vmem>>, vector<8x128xf32>
      tpu.vector_store %arg14[%c0_110, %c0_111], %157 {strides = array<i32>} : memref<8x128xf32, #tpu.memory_space<vmem>>, vector<8x128xf32>,
    } else {
    }
    return
  }
  func.func @transform_0(%arg0: i32, %arg1: i32) -> (i32, i32) {
    %c0_i32 = arith.constant 0 : i32
    return %arg1, %arg0 : i32, i32
  }
  func.func @transform_1(%arg0: i32, %arg1: i32) -> (i32, i32, i32) {
    %c0_i32 = arith.constant 0 : i32
    %c0_i32_0 = arith.constant 0 : i32
    return %c0_i32, %arg1, %arg0 : i32, i32, i32
  }
  func.func @transform_2(%arg0: i32, %arg1: i32) -> (i32, i32) {
    %c0_i32 = arith.constant 0 : i32
    %c0_i32_0 = arith.constant 0 : i32
    return %c0_i32, %arg0 : i32, i32
  }
  func.func @transform_3(%arg0: i32, %arg1: i32) -> (i32, i32) {
    %c0_i32 = arith.constant 0 : i32
    %c0_i32_0 = arith.constant 0 : i32
    %c0_i32_1 = arith.constant 0 : i32
    return %c0_i32, %c0_i32_0 : i32, i32
  }
  func.func @transform_4(%arg0: i32, %arg1: i32) -> (i32, i32) {
    %c0_i32 = arith.constant 0 : i32
    %c0_i32_0 = arith.constant 0 : i32
    %c0_i32_1 = arith.constant 0 : i32
    return %c0_i32, %c0_i32_0 : i32, i32
  }
  func.func @transform_5(%arg0: i32, %arg1: i32) -> (i32, i32) {
    %c0_i32 = arith.constant 0 : i32
    %c0_i32_0 = arith.constant 0 : i32
    %c0_i32_1 = arith.constant 0 : i32
    return %c0_i32, %c0_i32_0 : i32, i32
  }
  func.func @transform_6(%arg0: i32, %arg1: i32) -> (i32, i32) {
    %c0_i32 = arith.constant 0 : i32
    %c0_i32_0 = arith.constant 0 : i32
    %c0_i32_1 = arith.constant 0 : i32
    return %c0_i32, %c0_i32_0 : i32, i32
  }
  func.func @transform_7(%arg0: i32, %arg1: i32) -> (i32, i32) {
    %c0_i32 = arith.constant 0 : i32
    %c0_i32_0 = arith.constant 0 : i32
    %c0_i32_1 = arith.constant 0 : i32
    return %c0_i32, %c0_i32_0 : i32, i32
  }
  func.func @transform_8(%arg0: i32, %arg1: i32) -> (i32, i32) {
    %c0_i32 = arith.constant 0 : i32
    %c0_i32_0 = arith.constant 0 : i32
    %c0_i32_1 = arith.constant 0 : i32
    return %c0_i32, %c0_i32_0 : i32, i32
  }
  func.func @transform_9(%arg0: i32, %arg1: i32) -> (i32, i32) {
    %c0_i32 = arith.constant 0 : i32
    %c0_i32_0 = arith.constant 0 : i32
    %c0_i32_1 = arith.constant 0 : i32
    return %c0_i32, %c0_i32_0 : i32, i32
  }
  func.func @transform_10(%arg0: i32, %arg1: i32) -> (i32, i32) {
    %c0_i32 = arith.constant 0 : i32
    %c0_i32_0 = arith.constant 0 : i32
    return %c0_i32, %arg0 : i32, i32
  }
  func.func @transform_11(%arg0: i32, %arg1: i32) -> (i32, i32) {
    %c0_i32 = arith.constant 0 : i32
    %c0_i32_0 = arith.constant 0 : i32
    return %c0_i32, %arg0 : i32, i32
  }
  func.func @transform_12(%arg0: i32, %arg1: i32) -> (i32, i32) {
    %c0_i32 = arith.constant 0 : i32
    %c0_i32_0 = arith.constant 0 : i32
    return %c0_i32, %arg0 : i32, i32
  }
}

</mosaic_0001>

<bundles_post_ra>
// kernel: tpu_custom_call.1
= control target key start
LH: loop header
LB: loop body
LE: loop exit
PB: predicated region body
PF: predicated region fallthrough
CT: control target
= control target key end

     0   :  { %s3731_s0 = inlined_call_operand.hbm [shape: f32[256,256], index: 0, kind: input, shape index: {}]   ;;  %s3732_s1 = inlined_call_operand.hbm [shape: f32[3,256,256], index: 1, kind: input, shape index: {}]   ;;  %s3733_s2 = inlined_call_operand.vmem [shape: f32[6,256], index: 2, kind: input, shape index: {}]   ;;  %s3734_s3 = inlined_call_operand.vmem [shape: f32[4,6], index: 3, kind: input, shape index: {}]   ;;  %s3735_s4 = inlined_call_operand.vmem [shape: f32[4,1], index: 4, kind: input, shape index: {}]   ;;  %s3736_s5 = inlined_call_operand.vmem [shape: f32[8,6], index: 5, kind: input, shape index: {}]   ;;  %s3737_s6 = inlined_call_operand.vmem [shape: f32[8,3], index: 6, kind: input, shape index: {}]   ;;  %s3738_s7 = inlined_call_operand.vmem [shape: f32[8,1], index: 7, kind: input, shape index: {}]   ;;  %s3739_s8 = inlined_call_operand.vmem [shape: f32[3,4], index: 8, kind: input, shape index: {}]   ;;  %s3740_s9 = inlined_call_operand.vmem [shape: f32[1,4], index: 9, kind: input, shape index: {}]   ;;  %s3741_s10 = inlined_call_operand.hbm [shape: f32[4,256], index: 10, kind: output, shape index: {0}]   ;;  %s3742_s11 = inlined_call_operand.hbm [shape: f32[4,256], index: 11, kind: output, shape index: {1}]   ;;  %s3743_s12 = inlined_call_operand.hbm [shape: f32[8,256], index: 12, kind: output, shape index: {2}]  }
   0x1   :  { %3880 = sst [smem:[#allocation97_spill]] %s3731_s0 }
   0x2   :  { %3881 = sst [smem:[#allocation98_spill]] %s3735_s4 }
   0x3   :  { %3882 = sst [smem:[#allocation99_spill]] %s3737_s6 }
   0x4   :  { %3883 = sst [smem:[#allocation100_spill]] %s3739_s8 }
   0x5   :  { %3884 = sst [smem:[#allocation101_spill]] %s3740_s9 }
   0x6   :  { %3885 = sst [smem:[#allocation102_spill]] %s3741_s10 }
   0x7   :  { %3886 = sst [smem:[#allocation103_spill]] %s3742_s11 }
   0x8   :  { %3887 = sst [smem:[#allocation104_spill]] %s3743_s12 }
   0x9   :  { %18 = vsyncpa [#allocation5], 0 }
   0xa   :  { %20 = vsyncpa [#allocation5 + $0x1], 0 }
   0xb   :  { %21 = vsyncpa [#allocation9], 0 }
   0xc   :  { %23 = vsyncpa [#allocation9 + $0x1], 0 }
   0xd   :  { %24 = vsyncpa [#allocation7], 0 }
   0xe   :  { %25 = vsyncpa [#allocation12], 0 }
   0xf   :  { %26 = vsyncpa [#allocation6], 0 }
  0x10   :  { %28 = vsyncpa [#allocation6 + $0x1], 0 }
  0x11   :  { %29 = vsyncpa [#allocation15], 0 }
  0x12   :  { %31 = vsyncpa [#allocation15 + $0x1], 0  ;;  %s2516_s21 = smov 0   ;;  %s2518_s22 = smov 0  }
  0x13   :  { %s2520_s23 = smov 0   ;;  %s2522_s24 = smov 0  }
  0x14   :  { %s2524_s25 = smov 0   ;;  %s2526_s26 = smov 0  }
  0x15   :  { %s2528_s27 = smov 0   ;;  %s2530_s28 = smov 0  }
  0x16   :  { %s2532_s29 = smov 0   ;;  %s2534_s30 = smov 0  }
  0x17   :  { %s2536_s13 = smov 0  }
  0x18 LB: > { %3888 = sst [smem:[#allocation26_spill]] %s2394_s21  ;;  %s2570_s14 = sadd.s32 4294967295, %s2434_s13   ;;  %s2434_s13 = sphi %s2536_s13, %s37_s13   ;;  %s2430_s30 = sphi %s2534_s30, %s4125_s30   ;;  %s2426_s29 = sphi %s2532_s29, %s4124_s29   ;;  %s2422_s28 = sphi %s2530_s28, %s4123_s28   ;;  %s2418_s27 = sphi %s2528_s27, %s4122_s27   ;;  %s2414_s26 = sphi %s2526_s26, %s4115_s26   ;;  %s2410_s25 = sphi %s2524_s25, %s4121_s25   ;;  %s2406_s24 = sphi %s2522_s24, %s4120_s24   ;;  %s2402_s23 = sphi %s2520_s23, %s4113_s23   ;;  %s2398_s22 = sphi %s2518_s22, %s4119_s22   ;;  %s2394_s21 = sphi %s2516_s21, %s4118_s21  }
  0x19   : > { %3889 = sst [smem:[#allocation27_spill]] %s2402_s23  ;;  %s46_s16 = sadd.s32 1, %s2426_s29 }
  0x1a   : > { %3890 = sst [smem:[#allocation28_spill]] %s2414_s26  ;;  %s49_s17 = sadd.s32 1, %s2430_s30 }
  0x1b   : > { %3891 = sst [smem:[#allocation29_spill]] %s2434_s13  ;;  %p47_p0 = scmp.ge.s32.totalorder %s46_s16, 2 }
  0x1c   : > { %s58_s18 = sadd.s32 1, %s2414_s26  ;;  %p65_p1 = scmp.ne.s32.totalorder %s2414_s26, %s2410_s25 }
  0x1d   : > { %p66_p2 = scmp.eq.s32.totalorder %s2434_s13, 0  ;;  %s4127_s16 = smov (%p47_p0, %s46_s16), 0 }
  0x1e   : > { %3892 = sst [smem:[#allocation30_spill]] %s4127_s16  ;;  %s4129_s17 = smov (!%p47_p0, %s49_s17), %s2430_s30 }
  0x1f   : > { %s53_s19 = ssub.s32 %s2426_s29, %s4127_s16  ;;  %p2584_p3 = por %p66_p2, %p65_p1 }
  0x20   : > { %p51_p4 = scmp.ge.s32.totalorder %s4129_s17, 2  ;;  %p71_p5 = scmp.ne.s32.totalorder %s2410_s25, %s2406_s24 }
  0x21   : > { %p72_p6 = scmp.eq.s32.totalorder %s2570_s14, 0  ;;  %s285_s15 = sadd.s32 1, %s2402_s23 }
  0x22   : > { %s4131_s17 = smov (%p51_p4, %s4129_s17), 0  ;;  %p295_p8 = scmp.ne.s32.totalorder %s2402_s23, %s2398_s22 }
  0x23   : > { %3894 = sst [smem:[#allocation31_spill]] %s4131_s17  ;;  %p2595_p7 = por %p72_p6, %p71_p5 }
  0x24   : > { %s54_s12 = ssub.s32 %s2430_s30, %s4131_s17  ;;  %p296_p9 = scmp.eq.s32.totalorder %s2570_s14, 3 }
  0x25   : > { %s55_s10 = sor.u32 %s54_s12, %s53_s19  ;;  %p283_p10 = scmp.eq.s32.totalorder %s54_s12, 0 }
  0x26   : > { %p56_p11 = scmp.eq.s32.totalorder %s55_s10, 0  ;;  %p2604_p12 = por %p296_p9, %p295_p8 }
  0x27   : > { %s2609_s11 = scalar_select %p283_p10, %s2402_s23, %s285_s15  }
  0x28   : > { %s3896_s24 = scalar_select %p2604_p12, 1, 0 }
  0x29   : > { %3898 = sst [smem:[#allocation33_spill]] %s2609_s11  ;;  %p301_p13 = scmp.ne.s32.totalorder %s2398_s22, %s2394_s21 }
  0x2a   : > { %3897 = sst [smem:[#allocation32_spill]] %s3896_s24  ;;  %s3900_s6 = sadd.s32 4294967294, %s2434_s13  }
  0x2b   : > { %s2612_s4 = scalar_select %p56_p11, %s2414_s26, %s58_s18  }
  0x2c   : > { %p302_p0 = scmp.eq.s32.totalorder %s3900_s6, 3  ;;  %p1877_p1 = scmp.ge.s32.totalorder %s2434_s13, 1 }
  0x2d   : > { %3899 = sst [smem:[#allocation34_spill]] %s2612_s4  ;;  %p361_p2 = scmp.lt.s32.totalorder %s2434_s13, 5 }
  0x2e   : > { %p2620_p4 = por %p302_p0, %p301_p13  ;;  %s3904_s8 = sld [smem:[#allocation100_spill]] }
  0x2f   : > { %p2624_p5 = pnand %p1877_p1, %p361_p2  ;;  %s3905_s9 = sld [smem:[#allocation101_spill]] }
  0x30   : > { %s3901_s17 = scalar_select %p2620_p4, 1, 0 }
  0x31   : > { %p2005_p8 = pneg %p2624_p5  ;;  %s2436_s11 = smov [#allocation10]  }
  0x32   : > { %3902 = sst [smem:[#allocation35_spill]] %s3901_s17  ;;  %s2437_s23 = smov [#allocation11]  }
  0x33   : > { %p2006_p9 = pnand %p2005_p8, %p72_p6  ;;  %p1880_p10 = scmp.ge.s32.totalorder %s2434_s13, 4 }
  0x34   : > { %s388_s15 = sshll.u32 %s3904_s8, 4  ;;  %s2640_s10 = sand.u32 (!%p1880_p10), 1, %s2414_s26   ;;  %s389_s15 = int_to_ptr.vmem [resolvable:$true] %s388_s15 }
  0x35   : > { %s398_s6 = sshll.u32 %s3905_s9, 4  ;;  %405 = sbr.rel (%p1880_p10) target bundleno = 81 (0x51), region = 44  ;;  %s399_s6 = int_to_ptr.vmem [resolvable:$true] %s398_s6 }
  0x36   : > { %2008 = dma.vmem_to_smem (!%p2006_p9), %s389_s15, 64, %s2436_s11, [#allocation7]  }
  0x37   : > { %2011 = dma.vmem_to_smem (!%p2006_p9), %s399_s6, 16, %s2437_s23, [#allocation12]  }
  0x38   : > { %s1976_s4 = sshll.u32 (!%p1880_p10), %s2426_s29, 5  ;;  %s1881_s19 = sshll.u32 (!%p1880_p10), %s2640_s10, 7 }
  0x39   : > { %s418_s18 = sadd.s32 (!%p1880_p10), %s2430_s30, %s1976_s4  ;;  %s413_s9 = scalar_lea.vmem (!%p1880_p10), [#allocation4], %s1881_s19 }
  0x3a   : > { %s1884_s8 = sshll.u32 %s418_s18, 3  ;;  %s423_s17 = sshll.u32 %s413_s9, 4  ;;  %s424_s17 = int_to_ptr.vmem [resolvable:$true] %s423_s17 }
  0x3b   : > { %s3906_s0 = sld [smem:[#allocation97_spill]]  ;;  %s410_s21 = scalar_lea.sflag [#allocation5], %s2640_s10 }
  0x3c   : > { %s2438_s13 = smov 256   ;;  %s2439_s24 = smov 128  }
  0x3d   : > { %s2440_s26 = smov 8  }
  0x41   : > { %s420_s23 = scalar_lea.hbm %s3906_s0, %s1884_s8 }
  0x42   : > { %s421_s6 = sshll.u32 %s420_s23, 4  ;;  %s422_s6 = int_to_ptr.hbm [resolvable:$true] %s421_s6 }
  0x43   : > { %1984 = dma.hbm_to_vmem [thread:$0]  (%p2584_p3), %s422_s6, 2048, %s424_s17, %s410_s21, %s2438_s13, %s2439_s24, %s2440_s26  }
  0x44   : > { %s1978_s4 = smul.u32 384, %s2640_s10  ;;  %s444_s18 = scalar_lea.hbm %s3732_s1, %s1884_s8 }
  0x45   : > { %s457_s11 = sshll.u32 %s444_s18, 4  ;;  %s2441_s26 = smov 8192   ;;  %s458_s11 = int_to_ptr.hbm [resolvable:$true] %s457_s11 }
  0x46   : > { %s1985_s15 = scalar_select %p2584_p3, [#allocation0], [#allocation19] }
  0x47   : > { %s437_s23 = scalar_lea.vmem [#allocation8], %s1978_s4  ;;  %1986 = sst [smem:[#allocation18]] (%p2584_p3), %s2441_s26 }
  0x48   : > { %s459_s0 = sshll.u32 %s437_s23, 4  ;;  %s449_s21 = sld [smem:[%s1985_s15]]   ;;  %s460_s0 = int_to_ptr.vmem [resolvable:$true] %s459_s0 }
  0x49   : > { %s2442_s13 = smov 2048   ;;  %s2443_s17 = smov 16  }
  0x4a   : > { %1987 = sst [smem:[#allocation18 + $0x1]] (%p2584_p3), %s2442_s13  ;;  %s2444_s8 = smov 256  }
  0x4b   : > { %1988 = sst [smem:[#allocation18 + $0x2]] (%p2584_p3), %s2443_s17  ;;  %s2445_s24 = smov 128  }
  0x4c   : > { %1989 = sst [smem:[#allocation18 + $0x3]] (%p2584_p3), %s2444_s8  ;;  %s2446_s4 = smov 8  }
  0x4d   : > { %1990 = sst [smem:[#allocation18 + $0x4]] (%p2584_p3), %s2445_s24  ;;  %s434_s19 = scalar_lea.sflag [#allocation9], %s2640_s10 }
  0x4e   : > { %s1888_s6 = sshll.u32 %s449_s21, 26  ;;  %1991 = sst [smem:[#allocation18 + $0x5]] (%p2584_p3), %s2446_s4 }
  0x4f   : > { %s1889_s9 = sadd.s32 134217728, %s1888_s6  ;;  %s2447_s18 = smov [#allocation17]  }
  0x50   : > { %1992 = dma.general (%p2584_p3), %s458_s11, 6144, %s460_s0, %s434_s19, %s2447_s18, [#allocation18], %s1889_s9, 0  }
  0x51 PF: > { %491 = sbr.rel (%p2624_p5) target bundleno = 570 (0x23a), region = 60 }
  0x56   : > { %s493_s15 = sand.u32 1, %s2410_s25  }
  0x57   : > { %s1891_s23 = sshll.u32 %s493_s15, 7  ;;  %s494_s26 = scalar_lea.sflag [#allocation5], %s493_s15 }
  0x58   : > { %s2675_s13 = scalar_lea.vmem [#allocation4], %s1891_s23 }
  0x59   : > { %2369 = dma.done.wait (%p2595_p7), %s494_s26, 2048  }
  0x5a   : > { %2371 = vsyncadd (%p2595_p7), %s494_s26, 4294965248  ;;  %s1979_s10 = smul.u32 384, %s493_s15  ;;  %s504_s20 = scalar_lea.sflag [#allocation9], %s493_s15 }
  0x5c   : > { %s2681_s0 = scalar_lea.vmem [#allocation8], %s1979_s10 }
  0x5d   : > { %2373 = dma.done.wait (%p2595_p7), %s504_s20, 6144  }
  0x5e   : > { %2375 = vsyncadd (%p2595_p7), %s504_s20, 4294961152 }
  0x5f   : > { %2377 = dma.done.wait (%p72_p6), [#allocation7], 64  }
  0x60   : > { %2379 = vsyncadd (%p72_p6), [#allocation7], 4294967232 }
  0x61   : > { %2381 = dma.done.wait (%p72_p6), [#allocation12], 16  }
  0x62   : > { %2383 = vsyncadd (%p72_p6), [#allocation12], 4294967280 }
  0x63   : > { %523 = sfence }
  0x64   : > { %s2696_s12 = sand.u32 1, %s2398_s22   ;;  %p581_p3 = scmp.lt.s32.totalorder %s2422_s28, 1 }
  0x65   : > { %s1894_s16 = sshll.u32 %s2696_s12, 2  ;;  %s1896_s11 = sshll.u32 %s2696_s12, 3 }
  0x66   : > { %s582_s21 = scalar_select %p581_p3, %s2422_s28, 1 }
  0x67   : > { %s2707_s4 = scalar_lea.vmem [#allocation13], %s1894_s16  ;;  %s2709_s9 = scalar_lea.vmem [#allocation14], %s1894_s16 }
  0x68   : > { %s1897_s17 = sshll.u32 %s582_s21, 3  ;;  %s2711_s19 = scalar_lea.vmem [#allocation16], %s1896_s11 }
  0x69   : > { %s2705_s6 = scalar_lea.vmem %s3733_s2, %s1897_s17  ;;  %p1898_p6 = scmp.ne.s32.totalorder %s2418_s27, 0 }
  0x6b   : > { %588 = sbr.rel (%p1898_p6) target bundleno = 116 (0x74), region = 80 }
  0x70   : > { %v2448_v0 = vmov 0.0  }
  0x71   : > { %589 = vst [vmem:[%s2707_s4] sm:$0xf] %v2448_v0 }
  0x72   : > { %590 = vst [vmem:[#allocation2] sm:$0x1] %v2448_v0 }
  0x73   : > { %591 = vst [vmem:[#allocation3] sm:$0x7] %v2448_v0 }
  0x74 PF: > { %v592_v1 = vld [vmem:[%s2675_s13] sm:$0xff]  ;;  %v593_v2 = vld [vmem:[%s2675_s13 + $0x8] sm:$0xff]  ;;  %v594_v3 = vld [vmem:[%s2675_s13 + $0x10] sm:$0xff]  ;;  %v2449_v6 = vmov 0.0   ;;  %s2954_s18 = sld [smem:[#allocation10]]  ;;  %p1961_p7 = scmp.ne.s32.totalorder %s2418_s27, 1 }
  0x75   : > { %v595_v4 = vld [vmem:[%s2675_s13 + $0x18] sm:$0xff]  ;;  %vm608_vm0 = vcmp.ne.f32.partialorder %v592_v1, 0.0  ;;  %vm609_vm1 = vcmp.ne.f32.partialorder %v593_v2, 0.0  ;;  %vm610_vm2 = vcmp.ne.f32.partialorder %v594_v3, 0.0  ;;  %v596_v5 = vld [vmem:[%s2675_s13 + $0x20] sm:$0xff]  ;;  %v597_v9 = vld [vmem:[%s2675_s13 + $0x28] sm:$0xff] }
  0x76   : > { %vm611_vm3 = vcmp.ne.f32.partialorder %v595_v4, 0.0  ;;  %v2721_v7 = vsel %vm608_vm0, 1.0, %v2449_v6  ;;  %v2724_v8 = vsel %vm609_vm1, 1.0, %v2449_v6  ;;  %v598_v10 = vld [vmem:[%s2675_s13 + $0x30] sm:$0xff]  ;;  %v2729_v11 = vsel %vm610_vm2, 1.0, %v2449_v6  ;;  %v599_v12 = vld [vmem:[%s2675_s13 + $0x38] sm:$0xff] }
  0x77   : > { %3907 = vst [vmem:[#allocation36_spill] sm:$0xff] %v2721_v7  ;;  %vm612_vm4 = vcmp.ne.f32.partialorder %v596_v5, 0.0  ;;  %v2733_v13 = vld [vmem:[%s2681_s0] sm:$0xff]  ;;  %v2736_v14 = vld [vmem:[%s2681_s0 + $0x8] sm:$0xff]  ;;  %v2741_v17 = vsel %vm611_vm3, 1.0, %v2449_v6  ;;  %v2744_v18 = vld [vmem:[%s2681_s0 + $0x10] sm:$0xff]  ;;  %v707_v19 = vadd.f32 %v2724_v8, %v2721_v7 }
  0x78   : > { %3908 = vst [vmem:[#allocation37_spill] sm:$0xff] %v2724_v8  ;;  %v600_v15 = vld [vmem:[%s2675_s13 + $0x40] sm:$0xff]  ;;  %v601_v16 = vld [vmem:[%s2675_s13 + $0x48] sm:$0xff]  ;;  %v731_v20 = vmul.f32 %v2721_v7, %v2733_v13  ;;  %v732_v21 = vmul.f32 %v2724_v8, %v2736_v14  ;;  %vm613_vm5 = vcmp.ne.f32.partialorder %v597_v9, 0.0  ;;  %v733_v22 = vmul.f32 %v2729_v11, %v2744_v18  ;;  %v602_v23 = vld [vmem:[%s2675_s13 + $0x50] sm:$0xff]  ;;  %s3046_s15 = sld [smem:[#allocation10 + $0x80]] }
  0x79   : > { %3909 = vst [vmem:[#allocation38_spill] sm:$0xff] %v2729_v11  ;;  %v603_v24 = vld [vmem:[%s2675_s13 + $0x58] sm:$0xff]  ;;  %vm614_vm6 = vcmp.ne.f32.partialorder %v598_v10, 0.0  ;;  %vm615_vm7 = vcmp.ne.f32.partialorder %v599_v12, 0.0  ;;  %v2758_v25 = vsel %vm612_vm4, 1.0, %v2449_v6  ;;  %v708_v27 = vadd.f32 %v2729_v11, %v707_v19  ;;  %v604_v28 = vld [vmem:[%s2675_s13 + $0x60] sm:$0xff] }
  0x7a   : > { %3910 = vst [vmem:[#allocation39_spill] sm:$0xff] %v2736_v14  ;;  %v2761_v26 = vld [vmem:[%s2681_s0 + $0x18] sm:$0xff]  ;;  %vm616_vm8 = vcmp.ne.f32.partialorder %v600_v15, 0.0  ;;  %vm617_vm9 = vcmp.ne.f32.partialorder %v601_v16, 0.0  ;;  %v2766_v29 = vld [vmem:[%s2681_s0 + $0x80] sm:$0xff]  ;;  %v2769_v30 = vld [vmem:[%s2681_s0 + $0x88] sm:$0xff]  ;;  %v747_v32 = vadd.f32 %v732_v21, %v731_v20 }
  0x7b   : > { %3911 = vst [vmem:[#allocation40_spill] sm:$0xff] %v2741_v17  ;;  %v734_v31 = vmul.f32 %v2741_v17, %v2761_v26  ;;  %v605_v33 = vld [vmem:[%s2675_s13 + $0x68] sm:$0xff]  ;;  %v606_v34 = vld [vmem:[%s2675_s13 + $0x70] sm:$0xff]  ;;  %v2777_v35 = vsel %vm613_vm5, 1.0, %v2449_v6  ;;  %v2780_v36 = vld [vmem:[%s2681_s0 + $0x20] sm:$0xff]  ;;  %v709_v37 = vadd.f32 %v2741_v17, %v708_v27  ;;  %v771_v38 = vmul.f32 %v2766_v29, %v2721_v7  ;;  %s3058_s23 = sld [smem:[#allocation10 + $0x100]] }
  0x7c   : > { %3912 = vst [vmem:[#allocation41_spill] sm:$0xff] %v2744_v18  ;;  %v772_v39 = vmul.f32 %v2769_v30, %v2724_v8  ;;  %vm618_vm10 = vcmp.ne.f32.partialorder %v602_v23, 0.0  ;;  %vm619_vm11 = vcmp.ne.f32.partialorder %v603_v24, 0.0  ;;  %v2788_v40 = vld [vmem:[%s2681_s0 + $0x90] sm:$0xff]  ;;  %v735_v41 = vmul.f32 %v2758_v25, %v2780_v36  ;;  %v607_v43 = vld [vmem:[%s2675_s13 + $0x78] sm:$0xff]  ;;  %v2798_v45 = vld [vmem:[%s2681_s0 + $0x28] sm:$0xff] }
  0x7d   : > { %3913 = vst [vmem:[#allocation42_spill] sm:$0xff] %v2758_v25  ;;  %v748_v42 = vadd.f32 %v747_v32, %v733_v22  ;;  %vm620_vm12 = vcmp.ne.f32.partialorder %v604_v28, 0.0  ;;  %v2795_v44 = vsel %vm614_vm6, 1.0, %v2449_v6  ;;  %v710_v46 = vadd.f32 %v2758_v25, %v709_v37  ;;  %v2804_v48 = vld [vmem:[%s2681_s0 + $0x98] sm:$0xff]  ;;  %v2813_v52 = vld [vmem:[%s2681_s0 + $0x30] sm:$0xff]  ;;  %v2823_v57 = vld [vmem:[%s2681_s0 + $0xa0] sm:$0xff] }
  0x7e   : > { %3914 = vst [vmem:[#allocation43_spill] sm:$0xff] %v2761_v26  ;;  %v773_v47 = vmul.f32 %v2788_v40, %v2729_v11  ;;  %vm621_vm13 = vcmp.ne.f32.partialorder %v605_v33, 0.0  ;;  %vm622_vm14 = vcmp.ne.f32.partialorder %v606_v34, 0.0  ;;  %v736_v49 = vmul.f32 %v2777_v35, %v2798_v45  ;;  %v2832_v61 = vld [vmem:[%s2681_s0 + $0x38] sm:$0xff]  ;;  %v2846_v3 = vld [vmem:[%s2681_s0 + $0xa8] sm:$0xff]  ;;  %v2855_v10 = vld [vmem:[%s2681_s0 + $0x40] sm:$0xff] }
  0x7f   : > { %3915 = vst [vmem:[#allocation44_spill] sm:$0xff] %v2777_v35  ;;  %v749_v50 = vadd.f32 %v748_v42, %v734_v31  ;;  %v2810_v51 = vsel %vm615_vm7, 1.0, %v2449_v6  ;;  %v711_v53 = vadd.f32 %v2777_v35, %v710_v46  ;;  %v774_v54 = vmul.f32 %v2804_v48, %v2741_v17  ;;  %v2858_v12 = vld [vmem:[%s2681_s0 + $0x100] sm:$0xff]  ;;  %v2861_v15 = vld [vmem:[%s2681_s0 + $0x108] sm:$0xff]  ;;  %v2867_v21 = vld [vmem:[%s2681_s0 + $0xb0] sm:$0xff]  ;;  %s3122_s26 = sld [smem:[#allocation11]] }
  0x80   : > { %3916 = vst [vmem:[#allocation45_spill] sm:$0xff] %v2780_v36  ;;  %v787_v55 = vadd.f32 %v772_v39, %v771_v38  ;;  %vm623_vm15 = vcmp.ne.f32.partialorder %v607_v43, 0.0  ;;  %v2820_v56 = vsel %vm616_vm8, 1.0, %v2449_v6  ;;  %v737_v58 = vmul.f32 %v2795_v44, %v2813_v52  ;;  %v2880_v31 = vld [vmem:[%s2681_s0 + $0x48] sm:$0xff]  ;;  %v2883_v32 = vld [vmem:[%s2681_s0 + $0x110] sm:$0xff]  ;;  %v2893_v42 = vld [vmem:[%s2681_s0 + $0xb8] sm:$0xff] }
  0x81   : > { %3917 = vst [vmem:[#allocation46_spill] sm:$0xff] %v2788_v40  ;;  %v750_v59 = vadd.f32 %v749_v50, %v735_v41  ;;  %v2829_v60 = vsel %vm617_vm9, 1.0, %v2449_v6  ;;  %v712_v62 = vadd.f32 %v2795_v44, %v711_v53  ;;  %v775_v63 = vmul.f32 %v2823_v57, %v2758_v25  ;;  %v2904_v50 = vld [vmem:[%s2681_s0 + $0x50] sm:$0xff]  ;;  %v2907_v34 = vld [vmem:[%s2681_s0 + $0x118] sm:$0xff]  ;;  %s3174_s13 = sld [smem:[#allocation10 + $0x1]] }
  0x82   : > { %3918 = vst [vmem:[#allocation47_spill] sm:$0xff] %v2795_v44  ;;  %v788_v0 = vadd.f32 %v787_v55, %v773_v47  ;;  %v2839_v1 = vsel %vm618_vm10, 1.0, %v2449_v6  ;;  %v2843_v2 = vsel %vm619_vm11, 1.0, %v2449_v6  ;;  %v738_v4 = vmul.f32 %v2810_v51, %v2832_v61  ;;  %s3177_s10 = sld [smem:[#allocation10 + $0x81]] }
  0x83   : > { %3919 = vst [vmem:[#allocation48_spill] sm:$0xff] %v2798_v45  ;;  %v751_v5 = vadd.f32 %v750_v59, %v736_v49  ;;  %v2852_v9 = vsel %vm620_vm12, 1.0, %v2449_v6  ;;  %v713_v16 = vadd.f32 %v2810_v51, %v712_v62  ;;  %v776_v19 = vmul.f32 %v2846_v3, %v2777_v35  ;;  %v2916_v59 = vld [vmem:[%s2681_s0 + $0xc0] sm:$0xff]  ;;  %s1951_s20 = sld [smem:[#allocation10 + $0x101]] }
  0x84   : > { %3920 = vst [vmem:[#allocation49_spill] sm:$0xff] %v2804_v48  ;;  %v789_v20 = vadd.f32 %v788_v0, %v774_v54  ;;  %v739_v22 = vmul.f32 %v2820_v56, %v2855_v10  ;;  %v811_v24 = vmul.f32 %v2858_v12, %v2721_v7  ;;  %v812_v27 = vmul.f32 %v2861_v15, %v2724_v8  ;;  %v2923_v0 = vld [vmem:[%s2681_s0 + $0xc8] sm:$0xff]  ;;  %v2970_v7 = vld [vmem:[%s2681_s0 + $0x130] sm:$0xff]  ;;  %s3227_s16 = sld [smem:[#allocation11 + $0x1]] }
  0x85   : > { %3921 = vst [vmem:[#allocation50_spill] sm:$0xff] %v2810_v51  ;;  %v752_v23 = vadd.f32 %v751_v5, %v737_v58  ;;  %v2877_v28 = vsel %vm621_vm13, 1.0, %v2449_v6  ;;  %v714_v37 = vadd.f32 %v2820_v56, %v713_v16  ;;  %v777_v38 = vmul.f32 %v2867_v21, %v2795_v44  ;;  %v2913_v58 = vld [vmem:[%s2681_s0 + $0x58] sm:$0xff]  ;;  %v2967_v8 = vld [vmem:[%s2681_s0 + $0xe8] sm:$0xff]  ;;  %s1953_s11 = sld [smem:[#allocation10 + $0x2]] }
  0x86   : > { %3922 = vst [vmem:[#allocation51_spill] sm:$0xff] %v2813_v52  ;;  %v790_v39 = vadd.f32 %v789_v20, %v775_v63  ;;  %v2890_v41 = vsel %vm622_vm14, 1.0, %v2449_v6  ;;  %v740_v33 = vmul.f32 %v2829_v60, %v2880_v31  ;;  %v813_v47 = vmul.f32 %v2883_v32, %v2729_v11  ;;  %s3297_s21 = sld [smem:[#allocation10 + $0x82]] }
  0x87   : > { %3923 = vst [vmem:[#allocation52_spill] sm:$0xff] %v2820_v56  ;;  %v753_v46 = vadd.f32 %v752_v23, %v738_v4  ;;  %v2901_v49 = vsel %vm623_vm15, 1.0, %v2449_v6  ;;  %v715_v53 = vadd.f32 %v2829_v60, %v714_v37  ;;  %v778_v54 = vmul.f32 %v2893_v42, %v2810_v51  ;;  %v2926_v4 = vld [vmem:[%s2681_s0 + $0x120] sm:$0xff]  ;;  %v2937_v23 = vld [vmem:[%s2681_s0 + $0xd0] sm:$0xff]  ;;  %s1955_s17 = sld [smem:[#allocation10 + $0x102]] }
  0x88   : > { %3924 = vst [vmem:[#allocation53_spill] sm:$0xff] %v2823_v57  ;;  %v791_v55 = vadd.f32 %v790_v39, %v776_v19  ;;  %v741_v6 = vmul.f32 %v2839_v1, %v2904_v50  ;;  %v814_v62 = vmul.f32 %v2907_v34, %v2741_v17  ;;  %v827_v63 = vadd.f32 %v812_v27, %v811_v24  ;;  %s3358_s8 = sld [smem:[#allocation11 + $0x2]] }
  0x89   : > { %3925 = vst [vmem:[#allocation54_spill] sm:$0xff] %v2829_v60  ;;  %v754_v43 = vadd.f32 %v753_v46, %v739_v22  ;;  %v716_v5 = vadd.f32 %v2839_v1, %v715_v53  ;;  %v742_v16 = vmul.f32 %v2843_v2, %v2913_v58  ;;  %v779_v19 = vmul.f32 %v2916_v59, %v2820_v56  ;;  %v2934_v22 = vld [vmem:[%s2681_s0 + $0x60] sm:$0xff]  ;;  %v2944_v46 = vld [vmem:[%s2681_s0 + $0xd8] sm:$0xff]  ;;  %v2947_v53 = vld [vmem:[%s2681_s0 + $0x128] sm:$0xff]  ;;  %s1957_s24 = sld [smem:[#allocation10 + $0x3]] }
  0x8a   : > { %3926 = vst [vmem:[#allocation55_spill] sm:$0xff] %v2832_v61  ;;  %v792_v20 = vadd.f32 %v791_v55, %v777_v38  ;;  %v780_v27 = vmul.f32 %v2923_v0, %v2829_v60  ;;  %v815_v37 = vmul.f32 %v2926_v4, %v2758_v25  ;;  %v828_v39 = vadd.f32 %v827_v63, %v813_v47  ;;  %v2957_v25 = vld [vmem:[%s2681_s0 + $0x68] sm:$0xff]  ;;  %v2960_v47 = vld [vmem:[%s2681_s0 + $0xe0] sm:$0xff] }
  0x8b   : > { %3927 = vst [vmem:[#allocation56_spill] sm:$0xff] %v2839_v1  ;;  %v755_v24 = vadd.f32 %v754_v43, %v740_v33  ;;  %v717_v38 = vadd.f32 %v2843_v2, %v716_v5  ;;  %v743_v55 = vmul.f32 %v2852_v9, %v2934_v22  ;;  %v781_v33 = vmul.f32 %v2937_v23, %v2839_v1 }
  0x8c   : > { %3928 = vst [vmem:[#allocation57_spill] sm:$0xff] %v2843_v2  ;;  %v793_v43 = vadd.f32 %v792_v20, %v778_v54  ;;  %v782_v5 = vmul.f32 %v2944_v46, %v2843_v2  ;;  %v816_v17 = vmul.f32 %v2947_v53, %v2777_v35  ;;  %v829_v11 = vadd.f32 %v828_v39, %v814_v62 }
  0x8d   : > { %3929 = vst [vmem:[#allocation58_spill] sm:$0xff] %v2846_v3  ;;  %v756_v63 = vadd.f32 %v755_v24, %v741_v6  ;;  %v718_v54 = vadd.f32 %v2852_v9, %v717_v38  ;;  %v744_v20 = vmul.f32 %v2877_v28, %v2957_v25  ;;  %v783_v6 = vmul.f32 %v2960_v47, %v2852_v9 }
  0x8e   : > { %3930 = vst [vmem:[#allocation59_spill] sm:$0xff] %v2852_v9  ;;  %v794_v24 = vadd.f32 %v793_v43, %v779_v19  ;;  %v784_v39 = vmul.f32 %v2967_v8, %v2877_v28  ;;  %v817_v38 = vmul.f32 %v2970_v7, %v2795_v44  ;;  %v830_v35 = vadd.f32 %v829_v11, %v815_v37 }
  0x8f   : > { %3931 = vst [vmem:[#allocation60_spill] sm:$0xff] %v2855_v10  ;;  %v757_v62 = vadd.f32 %v756_v63, %v742_v16  ;;  %v719_v19 = vadd.f32 %v2877_v28, %v718_v54 }
  0x90   : > { %3932 = vst [vmem:[#allocation61_spill] sm:$0xff] %v2858_v12  ;;  %v795_v63 = vadd.f32 %v794_v24, %v780_v27  ;;  %v3002_v12 = vld [vmem:[%s2681_s0 + $0x140] sm:$0xff]  ;;  %v831_v44 = vadd.f32 %v830_v35, %v816_v17 }
  0x91   : > { %3933 = vst [vmem:[#allocation62_spill] sm:$0xff] %v2861_v15  ;;  %v2999_v15 = vld [vmem:[%s2681_s0 + $0xf8] sm:$0xff]  ;;  %v758_v37 = vadd.f32 %v757_v62, %v743_v55  ;;  %v720_v27 = vadd.f32 %v2890_v41, %v719_v19  ;;  %v819_v55 = vmul.f32 %v3002_v12, %v2820_v56  ;;  %v3030_v19 = vld [vmem:[%s2681_s0 + $0x168] sm:$0xff]  ;;  %v851_v56 = vstv %s2954_s18  ;;  %s1958_s18 = sld [smem:[#allocation10 + $0x83]] }
  0x92   : > { %3934 = vst [vmem:[#allocation63_spill] sm:$0xff] %v2867_v21  ;;  %v786_v24 = vmul.f32 %v2999_v15, %v2901_v49  ;;  %v3020_v62 = vld [vmem:[%s2681_s0 + $0x158] sm:$0xff] }
  0x93   : > { %3935 = vst [vmem:[#allocation64_spill] sm:$0xff] %v2877_v28 }
  0x94   : > { %3936 = vst [vmem:[#allocation65_spill] sm:$0xff] %v2880_v31 }
  0x95   : > { %3937 = vst [vmem:[#allocation66_spill] sm:$0xff] %v2883_v32  ;;  %v2991_v32 = vld [vmem:[%s2681_s0 + $0x138] sm:$0xff] }
  0x96   : > { %3938 = vst [vmem:[#allocation67_spill] sm:$0xff] %v2890_v41  ;;  %v818_v54 = vmul.f32 %v2991_v32, %v2810_v51  ;;  %v759_v51 = vadd.f32 %v758_v37, %v744_v20  ;;  %v3040_v20 = vld [vmem:[%s2681_s0 + $0x178] sm:$0xff] }
  0x97   : > { %3939 = vst [vmem:[#allocation68_spill] sm:$0xff] %v2893_v42 }
  0x98   : > { %3940 = vst [vmem:[#allocation69_spill] sm:$0xff] %v2901_v49 }
  0x99   : > { %3941 = vst [vmem:[#allocation70_spill] sm:$0xff] %v2904_v50 }
  0x9a   : > { %3942 = vst [vmem:[#allocation71_spill] sm:$0xff] %v2907_v34  ;;  %v2981_v34 = vld [vmem:[%s2681_s0 + $0xf0] sm:$0xff] }
  0x9b   : > { %3943 = vst [vmem:[#allocation72_spill] sm:$0xff] %v2913_v58  ;;  %v785_v16 = vmul.f32 %v2981_v34, %v2890_v41 }
  0x9c   : > { %3944 = vst [vmem:[#allocation73_spill] sm:$0xff] %v2916_v59 }
  0x9d   : > { %3945 = vst [vmem:[#allocation74_spill] sm:$0xff] %v2923_v0 }
  0x9e   : > { %3946 = vst [vmem:[#allocation75_spill] sm:$0xff] %v2926_v4  ;;  %v2978_v4 = vld [vmem:[%s2681_s0 + $0x70] sm:$0xff] }
  0x9f   : > { %3947 = vst [vmem:[#allocation76_spill] sm:$0xff] %v2934_v22  ;;  %v745_v43 = vmul.f32 %v2890_v41, %v2978_v4 }
  0xa0   : > { %3948 = vst [vmem:[#allocation77_spill] sm:$0xff] %v2937_v23 }
  0xa1   : > { %3949 = vst [vmem:[#allocation78_spill] sm:$0xff] %v2944_v46  ;;  %v760_v37 = vadd.f32 %v759_v51, %v745_v43  ;;  %v3053_v51 = vmul.f32 %v851_v56, %v2733_v13  ;;  %v3056_v43 = vmul.f32 %v851_v56, %v2736_v14 }
  0xa2   : > { %3950 = vst [vmem:[#allocation79_spill] sm:$0xff] %v2947_v53  ;;  %v2988_v53 = vld [vmem:[%s2681_s0 + $0x78] sm:$0xff] }
  0xa3   : > { %3951 = vst [vmem:[#allocation80_spill] sm:$0xff] %v2957_v25  ;;  %v746_v11 = vmul.f32 %v2901_v49, %v2988_v53 }
  0xa4   : > { %3952 = vst [vmem:[#allocation81_spill] sm:$0xff] %v2960_v47  ;;  %v3027_v47 = vld [vmem:[%s2681_s0 + $0x160] sm:$0xff] }
  0xa5   : > { %3953 = vst [vmem:[#allocation82_spill] sm:$0xff] %v2967_v8  ;;  %v3012_v8 = vld [vmem:[%s2681_s0 + $0x150] sm:$0xff] }
  0xa6   : > { %3954 = vst [vmem:[#allocation83_spill] sm:$0xff] %v2970_v7  ;;  %v3009_v7 = vld [vmem:[%s2681_s0 + $0x148] sm:$0xff]  ;;  %v821_v35 = vmul.f32 %v3012_v8, %v2839_v1  ;;  %v823_v1 = vmul.f32 %v3027_v47, %v2852_v9 }
  0xa7   : > { %3955 = vst [vmem:[#allocation84_spill] sm:$0xff] %v2978_v4  ;;  %v820_v17 = vmul.f32 %v3009_v7, %v2829_v60  ;;  %v761_v60 = vadd.f32 %v760_v37, %v746_v11  ;;  %v3067_v11 = vmul.f32 %v851_v56, %v2780_v36  ;;  %v3085_v36 = vmul.f32 %v851_v56, %v2904_v50 }
  0xa8   : > { %3956 = vst [vmem:[#allocation85_spill] sm:$0xff] %v2981_v34  ;;  %v796_v34 = vadd.f32 %v795_v63, %v781_v33  ;;  %v822_v63 = vmul.f32 %v3020_v62, %v2843_v2  ;;  %v826_v2 = vmul.f32 %v3040_v20, %v2901_v49  ;;  %v3104_v50 = vstv %s3058_s23  ;;  %s3464_s23 = sld [smem:[#allocation11 + $0x3]] }
  0xa9   : > { %3957 = vst [vmem:[#allocation86_spill] sm:$0xff] %v2988_v53 }
  0xaa   : > { %3958 = vst [vmem:[#allocation87_spill] sm:$0xff] %v2991_v32  ;;  %v832_v32 = vadd.f32 %v831_v44, %v817_v38  ;;  %v797_v33 = vadd.f32 %v796_v34, %v782_v5  ;;  %v824_v44 = vmul.f32 %v3030_v19, %v2877_v28 }
  0xab   : > { %3959 = vst [vmem:[#allocation88_spill] sm:$0xff] %v2999_v15  ;;  %v721_v15 = vadd.f32 %v2901_v49, %v720_v27 }
  0xac   : > { %3960 = vst [vmem:[#allocation89_spill] sm:$0xff] %v3002_v12  ;;  %v3037_v12 = vld [vmem:[%s2681_s0 + $0x170] sm:$0xff]  ;;  %v833_v38 = vadd.f32 %v832_v32, %v818_v54  ;;  %v798_v34 = vadd.f32 %v797_v33, %v783_v6  ;;  %v3061_v6 = vmul.f32 %v851_v56, %v2744_v18  ;;  %v3064_v33 = vmul.f32 %v851_v56, %v2761_v26 }
  0xad   : > { %3961 = vst [vmem:[#allocation90_spill] sm:$0xff] %v3009_v7  ;;  %v722_v27 = vrot.slane %v721_v15, 4  ;;  %v825_v5 = vmul.f32 %v3037_v12, %v2890_v41  ;;  %v762_v41 = vrot.slane %v761_v60, 4  ;;  %v3079_v26 = vmul.f32 %v851_v56, %v2855_v10 }
  0xae   : > { %3962 = vst [vmem:[#allocation91_spill] sm:$0xff] %v3012_v8  ;;  %v799_v54 = vadd.f32 %v798_v34, %v784_v39  ;;  %v3076_v39 = vmul.f32 %v851_v56, %v2832_v61 }
  0xaf   : > { %3963 = vst [vmem:[#allocation92_spill] sm:$0xff] %v3020_v62  ;;  %v834_v62 = vadd.f32 %v833_v38, %v819_v55  ;;  %v723_v32 = vadd.f32 %v722_v27, %v721_v15  ;;  %v3070_v55 = vmul.f32 %v851_v56, %v2798_v45  ;;  %v3073_v15 = vmul.f32 %v851_v56, %v2813_v52 }
  0xb0   : > { %3964 = vst [vmem:[#allocation93_spill] sm:$0xff] %v3027_v47  ;;  %v800_v38 = vadd.f32 %v799_v54, %v785_v16  ;;  %v763_v27 = vadd.f32 %v762_v41, %v761_v60  ;;  %v3088_v16 = vmul.f32 %v851_v56, %v2913_v58  ;;  %v3091_v60 = vmul.f32 %v851_v56, %v2934_v22 }
  0xb1   : > { %3965 = vst [vmem:[#allocation94_spill] sm:$0xff] %v3030_v19  ;;  %v835_v49 = vadd.f32 %v834_v62, %v820_v17  ;;  %v724_v37 = vrot.slane %v723_v32, 2  ;;  %v3082_v62 = vmul.f32 %v851_v56, %v2880_v31  ;;  %v869_v41 = vstv %s3046_s15  ;;  %s1959_s15 = sld [smem:[#allocation10 + $0x103]] }
  0xb2   : > { %3966 = vst [vmem:[#allocation95_spill] sm:$0xff] %v3037_v12  ;;  %v801_v45 = vadd.f32 %v800_v38, %v786_v24  ;;  %v764_v54 = vrot.slane %v763_v27, 2  ;;  %v3095_v31 = vmul.f32 %v851_v56, %v2957_v25  ;;  %v706_v24 = vld [vmem:[#allocation2] sm:$0x1]  ;;  %v3101_v58 = vmul.f32 %v851_v56, %v2988_v53 }
  0xb3   : > { %3967 = vst [vmem:[#allocation96_spill] sm:$0xff] %v3040_v20  ;;  %v836_v34 = vadd.f32 %v835_v49, %v821_v35  ;;  %v725_v17 = vadd.f32 %v724_v37, %v723_v32  ;;  %v3098_v32 = vmul.f32 %v851_v56, %v2978_v4  ;;  %v870_v22 = vmul.f32 %v2766_v29, %v869_v41 }
  0xb4   : > { %v802_v35 = vrot.slane %v801_v45, 4  ;;  %v765_v37 = vadd.f32 %v764_v54, %v763_v27  ;;  %v871_v10 = vmul.f32 %v2769_v30, %v869_v41  ;;  %v872_v18 = vmul.f32 %v2788_v40, %v869_v41  ;;  %v730_v27 = vld [vmem:[#allocation3] sm:$0x1]  ;;  %v3968_v40 = vld [vmem:[#allocation81_spill] sm:$0xff] }
  0xb5   : > { %v837_v61 = vadd.f32 %v836_v34, %v822_v63  ;;  %v726_v49 = vrot.slane %v725_v17, 1  ;;  %v873_v4 = vmul.f32 %v2804_v48, %v869_v41  ;;  %v874_v56 = vmul.f32 %v2823_v57, %v869_v41 }
  0xb6   : > { %v803_v34 = vadd.f32 %v802_v35, %v801_v45  ;;  %v766_v52 = vrot.slane %v765_v37, 1  ;;  %v876_v45 = vmul.f32 %v2867_v21, %v869_v41  ;;  %v881_v57 = vmul.f32 %v2944_v46, %v869_v41 }
  0xb7   : > { %v838_v38 = vadd.f32 %v837_v61, %v823_v1  ;;  %v727_v63 = vadd.f32 %v726_v49, %v725_v17  ;;  %v875_v1 = vmul.f32 %v2846_v3, %v869_v41  ;;  %v877_v49 = vmul.f32 %v2893_v42, %v869_v41  ;;  %v3971_v42 = vld [vmem:[#allocation88_spill] sm:$0xff] }
  0xb8   : > { %v804_v61 = vrot.slane %v803_v34, 2  ;;  %v767_v54 = vadd.f32 %v766_v52, %v765_v37  ;;  %v882_v3 = vmul.f32 %v3968_v40, %v869_v41  ;;  %v3970_v37 = vld [vmem:[#allocation85_spill] sm:$0xff]  ;;  %v888_v40 = vadd.f32 %v872_v18, %v3061_v6 }
  0xb9   : > { %v839_v25 = vadd.f32 %v838_v38, %v824_v44  ;;  %v728_v14 = vadd.f32 %v727_v63, %v706_v24  ;;  %v878_v44 = vmul.f32 %v2916_v59, %v869_v41  ;;  %v879_v38 = vmul.f32 %v2923_v0, %v869_v41 }
  0xba   : > { %v805_v35 = vadd.f32 %v804_v61, %v803_v34  ;;  %v880_v24 = vmul.f32 %v2937_v23, %v869_v41  ;;  %v768_v63 = vadd.f32 %v767_v54, %v730_v27  ;;  %v884_v21 = vmul.f32 %v3970_v37, %v869_v41  ;;  %v770_v34 = vld [vmem:[#allocation3 + $0x1] sm:$0x1]  ;;  %v3972_v27 = vld [vmem:[#allocation61_spill] sm:$0xff]  ;;  %v3973_v37 = vld [vmem:[#allocation62_spill] sm:$0xff] }
  0xbb   : > { %v840_v17 = vadd.f32 %v839_v25, %v825_v5  ;;  %729 = vst [vmem:[#allocation2] sm:$0x1] %v728_v14  ;;  %v3969_v25 = vld [vmem:[#allocation82_spill] sm:$0xff]  ;;  %v885_v14 = vmul.f32 %v3971_v42, %v869_v41  ;;  %v886_v23 = vadd.f32 %v870_v22, %v3053_v51  ;;  %v904_v54 = vmul.f32 %v3972_v27, %v3104_v50 }
  0xbc   : > { %v806_v52 = vrot.slane %v805_v35, 1  ;;  %v883_v5 = vmul.f32 %v3969_v25, %v869_v41  ;;  %769 = vst [vmem:[#allocation3] sm:$0x1] %v768_v63  ;;  %v889_v25 = vadd.f32 %v873_v4, %v3064_v33  ;;  %v905_v41 = vmul.f32 %v3973_v37, %v3104_v50  ;;  %v3974_v22 = vld [vmem:[#allocation66_spill] sm:$0xff] }
  0xbd   : > { %v841_v48 = vadd.f32 %v840_v17, %v826_v2  ;;  %v887_v2 = vadd.f32 %v871_v10, %v3056_v43  ;;  %v890_v63 = vadd.f32 %v874_v56, %v3067_v11  ;;  %v891_v46 = vadd.f32 %v875_v1, %v3070_v55 }
  0xbe   : > { %v807_v17 = vadd.f32 %v806_v52, %v805_v35  ;;  %v906_v51 = vmul.f32 %v3974_v22, %v3104_v50  ;;  %v892_v43 = vadd.f32 %v876_v45, %v3073_v15  ;;  %v893_v35 = vadd.f32 %v877_v49, %v3076_v39 }
  0xbf   : > { %v842_v61 = vrot.slane %v841_v48, 4  ;;  %v894_v18 = vadd.f32 %v878_v44, %v3079_v26  ;;  %v895_v4 = vadd.f32 %v879_v38, %v3082_v62  ;;  %v920_v11 = vadd.f32 %v904_v54, %v886_v23  ;;  %v3976_v26 = vld [vmem:[#allocation75_spill] sm:$0xff] }
  0xc0   : > { %v808_v10 = vadd.f32 %v807_v17, %v770_v34  ;;  %v896_v55 = vadd.f32 %v880_v24, %v3085_v36  ;;  %v897_v56 = vadd.f32 %v881_v57, %v3088_v16  ;;  %v898_v1 = vadd.f32 %v882_v3, %v3091_v60  ;;  %v3977_v23 = vld [vmem:[#allocation79_spill] sm:$0xff] }
  0xc1   : > { %v843_v42 = vadd.f32 %v842_v61, %v841_v48  ;;  %v3975_v48 = vld [vmem:[#allocation71_spill] sm:$0xff]  ;;  %v921_v15 = vadd.f32 %v905_v41, %v887_v2  ;;  %v899_v39 = vadd.f32 %v883_v5, %v3095_v31  ;;  %v908_v49 = vmul.f32 %v3976_v26, %v3104_v50 }
  0xc2   : > { %v907_v33 = vmul.f32 %v3975_v48, %v3104_v50  ;;  %809 = vst [vmem:[#allocation3 + $0x1] sm:$0x1] %v808_v10  ;;  %v922_v44 = vadd.f32 %v906_v51, %v888_v40  ;;  %v900_v62 = vadd.f32 %v884_v21, %v3098_v32  ;;  %v901_v38 = vadd.f32 %v885_v14, %v3101_v58  ;;  %v3978_v57 = vld [vmem:[#allocation83_spill] sm:$0xff]  ;;  %v3980_v40 = vld [vmem:[#allocation89_spill] sm:$0xff] }
  0xc3   : > { %v844_v6 = vrot.slane %v843_v42, 2  ;;  %v909_v52 = vmul.f32 %v3977_v23, %v3104_v50  ;;  %v937_v36 = vstv %s3122_s26  ;;  %v910_v3 = vmul.f32 %v3978_v57, %v3104_v50  ;;  %v810_v60 = vld [vmem:[#allocation3 + $0x2] sm:$0x1] }
  0xc4   : > { %v923_v16 = vadd.f32 %v907_v33, %v889_v25  ;;  %v3979_v31 = vld [vmem:[#allocation87_spill] sm:$0xff]  ;;  %v912_v34 = vmul.f32 %v3980_v40, %v3104_v50  ;;  %v913_v21 = vmul.f32 %v3009_v7, %v3104_v50  ;;  %v939_v58 = vadd.f32 %v937_v36, %v921_v15  ;;  %v3981_v25 = vld [vmem:[#allocation92_spill] sm:$0xff] }
  0xc5   : > { %v845_v45 = vadd.f32 %v844_v6, %v843_v42  ;;  %v938_v42 = vadd.f32 %v937_v36, %v920_v11  ;;  %v911_v5 = vmul.f32 %v3979_v31, %v3104_v50  ;;  %v914_v14 = vmul.f32 %v3012_v8, %v3104_v50 }
  0xc6   : > { %v924_v61 = vadd.f32 %v908_v49, %v890_v63  ;;  %v940_v2 = vadd.f32 %v937_v36, %v922_v44  ;;  %v915_v54 = vmul.f32 %v3981_v25, %v3104_v50  ;;  %v916_v17 = vmul.f32 %v3027_v47, %v3104_v50 }
  0xc7   : > { %v846_v24 = vrot.slane %v845_v45, 1  ;;  %v917_v41 = vmul.f32 %v3030_v19, %v3104_v50  ;;  %v918_v51 = vmul.f32 %v3037_v12, %v3104_v50  ;;  %v925_v6 = vadd.f32 %v909_v52, %v891_v46  ;;  %v3982_v52 = vld [vmem:[#allocation36_spill] sm:$0xff] }
  0xc8   : > { %v941_v33 = vadd.f32 %v937_v36, %v923_v16  ;;  %v955_v11 = vmax.f32 %v938_v42, 0.0  ;;  %v919_v63 = vmul.f32 %v3040_v20, %v3104_v50  ;;  %v926_v15 = vadd.f32 %v910_v3, %v892_v43  ;;  %v3983_v3 = vld [vmem:[#allocation37_spill] sm:$0xff] }
  0xc9   : > { %v847_v32 = vadd.f32 %v846_v24, %v845_v45  ;;  %v927_v45 = vadd.f32 %v911_v5, %v893_v35  ;;  %v956_v49 = vmax.f32 %v939_v58, 0.0  ;;  %v928_v44 = vadd.f32 %v912_v34, %v894_v18 }
  0xca   : > { %v929_v24 = vadd.f32 %v913_v21, %v895_v4  ;;  %v942_v47 = vadd.f32 %v937_v36, %v924_v61  ;;  %v957_v25 = vmax.f32 %v940_v2, 0.0  ;;  %v930_v8 = vadd.f32 %v914_v14, %v896_v55 }
  0xcb   : > { %v848_v10 = vadd.f32 %v847_v32, %v810_v60  ;;  %v931_v19 = vadd.f32 %v915_v54, %v897_v56  ;;  %v932_v7 = vadd.f32 %v916_v17, %v898_v1  ;;  %v933_v40 = vadd.f32 %v917_v41, %v899_v39  ;;  %v3984_v56 = vld [vmem:[#allocation38_spill] sm:$0xff]  ;;  %v3985_v32 = vld [vmem:[#allocation40_spill] sm:$0xff] }
  0xcc   : > { %v934_v12 = vadd.f32 %v918_v51, %v900_v62  ;;  %v943_v60 = vadd.f32 %v937_v36, %v925_v6  ;;  %v958_v46 = vmax.f32 %v941_v33, 0.0  ;;  %v971_v16 = vmul.f32 %v3982_v52, %v955_v11  ;;  %v3986_v41 = vld [vmem:[#allocation42_spill] sm:$0xff] }
  0xcd   : > { %849 = vst [vmem:[#allocation3 + $0x2] sm:$0x1] %v848_v10  ;;  %v935_v50 = vadd.f32 %v919_v63, %v901_v38  ;;  %v944_v43 = vadd.f32 %v937_v36, %v926_v15  ;;  %v945_v35 = vadd.f32 %v937_v36, %v927_v45  ;;  %v972_v42 = vmul.f32 %v3983_v3, %v956_v49  ;;  %v3989_v49 = vld [vmem:[#allocation50_spill] sm:$0xff] }
  0xce   : > { %v946_v18 = vadd.f32 %v937_v36, %v928_v44  ;;  %v947_v4 = vadd.f32 %v937_v36, %v929_v24  ;;  %v959_v55 = vmax.f32 %v942_v47, 0.0  ;;  %v973_v1 = vmul.f32 %v3984_v56, %v957_v25 }
  0xcf   : > { %v948_v39 = vadd.f32 %v937_v36, %v930_v8  ;;  %v949_v62 = vadd.f32 %v937_v36, %v931_v19  ;;  %v950_v5 = vadd.f32 %v937_v36, %v932_v7  ;;  %v951_v34 = vadd.f32 %v937_v36, %v933_v40 }
  0xd0   : > { %v952_v21 = vadd.f32 %v937_v36, %v934_v12  ;;  %v960_v58 = vmax.f32 %v943_v60, 0.0  ;;  %v974_v38 = vmul.f32 %v3985_v32, %v958_v46  ;;  %v987_v14 = vadd.f32 %v972_v42, %v971_v16  ;;  %v3987_v12 = vld [vmem:[#allocation44_spill] sm:$0xff] }
  0xd1   : > { %v953_v61 = vadd.f32 %v937_v36, %v935_v50  ;;  %v961_v2 = vmax.f32 %v944_v43, 0.0  ;;  %v962_v54 = vmax.f32 %v945_v35, 0.0  ;;  %v963_v17 = vmax.f32 %v946_v18, 0.0  ;;  %v3988_v36 = vld [vmem:[#allocation47_spill] sm:$0xff]  ;;  %v3990_v46 = vld [vmem:[#allocation52_spill] sm:$0xff]  ;;  %v3991_v50 = vld [vmem:[#allocation54_spill] sm:$0xff] }
  0xd2   : > { %v975_v47 = vmul.f32 %v3986_v41, %v959_v55  ;;  %v988_v51 = vadd.f32 %v987_v14, %v973_v1  ;;  %v964_v25 = vmax.f32 %v947_v4, 0.0  ;;  %v965_v10 = vmax.f32 %v948_v39, 0.0  ;;  %v3992_v35 = vld [vmem:[#allocation56_spill] sm:$0xff]  ;;  %v3993_v18 = vld [vmem:[#allocation57_spill] sm:$0xff]  ;;  %v3994_v39 = vld [vmem:[#allocation67_spill] sm:$0xff] }
  0xd3   : > { %v966_v8 = vmax.f32 %v949_v62, 0.0  ;;  %v967_v19 = vmax.f32 %v950_v5, 0.0  ;;  %v968_v7 = vmax.f32 %v951_v34, 0.0  ;;  %v969_v40 = vmax.f32 %v952_v21, 0.0  ;;  %v3995_v34 = vld [vmem:[#allocation69_spill] sm:$0xff] }
  0xd4   : > { %v976_v6 = vmul.f32 %v3987_v12, %v960_v58  ;;  %v989_v33 = vadd.f32 %v988_v51, %v974_v38  ;;  %v970_v11 = vmax.f32 %v953_v61, 0.0  ;;  %v1011_v63 = vstv %s3174_s13  ;;  %v3996_v38 = vld [vmem:[#allocation39_spill] sm:$0xff]  ;;  %v3997_v61 = vld [vmem:[#allocation41_spill] sm:$0xff] }
  0xd5   : > { %v1029_v15 = vstv %s3177_s10  ;;  %v977_v45 = vmul.f32 %v3988_v36, %v961_v2  ;;  %v978_v44 = vmul.f32 %v3989_v49, %v962_v54  ;;  %v3187_v60 = vstv %s1951_s20  ;;  %v3999_v51 = vld [vmem:[#allocation45_spill] sm:$0xff] }
  0xd6   : > { %v990_v24 = vadd.f32 %v989_v33, %v975_v47  ;;  %v979_v16 = vmul.f32 %v3990_v46, %v963_v17  ;;  %v980_v43 = vmul.f32 %v3991_v50, %v964_v25  ;;  %v981_v42 = vmul.f32 %v3992_v35, %v965_v10  ;;  %v3998_v17 = vld [vmem:[#allocation43_spill] sm:$0xff]  ;;  %v4000_v10 = vld [vmem:[#allocation48_spill] sm:$0xff]  ;;  %v4010_v35 = vld [vmem:[#allocation46_spill] sm:$0xff] }
  0xd7   : > { %v982_v4 = vmul.f32 %v3993_v18, %v966_v8  ;;  %v983_v55 = vmul.f32 %v2852_v9, %v967_v19  ;;  %v3195_v1 = vmul.f32 %v2877_v28, %v968_v7  ;;  %v3198_v62 = vmul.f32 %v3994_v39, %v969_v40  ;;  %v4001_v19 = vld [vmem:[#allocation51_spill] sm:$0xff]  ;;  %v4003_v33 = vld [vmem:[#allocation60_spill] sm:$0xff]  ;;  %v4005_v39 = vld [vmem:[#allocation70_spill] sm:$0xff] }
  0xd8   : > { %v991_v5 = vadd.f32 %v990_v24, %v976_v6  ;;  %v3201_v21 = vmul.f32 %v3995_v34, %v970_v11  ;;  %v1012_v58 = vmul.f32 %v1011_v63, %v2733_v13  ;;  %v1013_v14 = vmul.f32 %v1011_v63, %v3996_v38  ;;  %v4002_v40 = vld [vmem:[#allocation55_spill] sm:$0xff]  ;;  %v4004_v24 = vld [vmem:[#allocation65_spill] sm:$0xff]  ;;  %v4006_v28 = vld [vmem:[#allocation72_spill] sm:$0xff] }
  0xd9   : > { %v1014_v2 = vmul.f32 %v1011_v63, %v3997_v61  ;;  %v1015_v47 = vmul.f32 %v1011_v63, %v3998_v17  ;;  %v1016_v25 = vmul.f32 %v1011_v63, %v3999_v51  ;;  %v1017_v8 = vmul.f32 %v1011_v63, %v4000_v10  ;;  %v4008_v17 = vld [vmem:[#allocation80_spill] sm:$0xff] }
  0xda   : > { %v992_v54 = vadd.f32 %v991_v5, %v977_v45  ;;  %v1018_v7 = vmul.f32 %v1011_v63, %v4001_v19  ;;  %v1019_v6 = vmul.f32 %v1011_v63, %v4002_v40  ;;  %v1020_v11 = vmul.f32 %v1011_v63, %v4003_v33  ;;  %v4007_v45 = vld [vmem:[#allocation76_spill] sm:$0xff] }
  0xdb   : > { %v1021_v34 = vmul.f32 %v1011_v63, %v4004_v24  ;;  %v1022_v38 = vmul.f32 %v1011_v63, %v4005_v39  ;;  %v1023_v61 = vmul.f32 %v1011_v63, %v4006_v28  ;;  %v1024_v5 = vmul.f32 %v1011_v63, %v4007_v45  ;;  %v4009_v51 = vld [vmem:[#allocation84_spill] sm:$0xff]  ;;  %v4012_v39 = vld [vmem:[#allocation53_spill] sm:$0xff]  ;;  %v4013_v28 = vld [vmem:[#allocation58_spill] sm:$0xff] }
  0xdc   : > { %v993_v13 = vadd.f32 %v992_v54, %v978_v44  ;;  %v1025_v9 = vmul.f32 %v1011_v63, %v4008_v17  ;;  %v1026_v18 = vmul.f32 %v1011_v63, %v4009_v51  ;;  %v1030_v10 = vmul.f32 %v2766_v29, %v1029_v15  ;;  %v4011_v44 = vld [vmem:[#allocation49_spill] sm:$0xff]  ;;  %v4014_v45 = vld [vmem:[#allocation63_spill] sm:$0xff]  ;;  %v4015_v17 = vld [vmem:[#allocation68_spill] sm:$0xff] }
  0xdd   : > { %v1031_v19 = vmul.f32 %v2769_v30, %v1029_v15  ;;  %v1027_v33 = vmul.f32 %v1011_v63, %v2988_v53  ;;  %v1032_v24 = vmul.f32 %v4010_v35, %v1029_v15  ;;  %v1033_v54 = vmul.f32 %v4011_v44, %v1029_v15  ;;  %v4016_v63 = vld [vmem:[#allocation77_spill] sm:$0xff]  ;;  %v4017_v44 = vld [vmem:[#allocation78_spill] sm:$0xff] }
  0xde   : > { %v994_v40 = vadd.f32 %v993_v13, %v979_v16  ;;  %v1034_v50 = vmul.f32 %v4012_v39, %v1029_v15  ;;  %v1035_v46 = vmul.f32 %v4013_v28, %v1029_v15  ;;  %v1036_v49 = vmul.f32 %v4014_v45, %v1029_v15  ;;  %v4018_v51 = vld [vmem:[#allocation81_spill] sm:$0xff] }
  0xdf   : > { %v1037_v36 = vmul.f32 %v4015_v17, %v1029_v15  ;;  %v1038_v30 = vmul.f32 %v2916_v59, %v1029_v15  ;;  %v1039_v16 = vmul.f32 %v2923_v0, %v1029_v15  ;;  %v1040_v13 = vmul.f32 %v4016_v63, %v1029_v15  ;;  %v4020_v59 = vld [vmem:[#allocation85_spill] sm:$0xff]  ;;  %v4021_v0 = vld [vmem:[#allocation88_spill] sm:$0xff] }
  0xe0   : > { %v995_v29 = vadd.f32 %v994_v40, %v980_v43  ;;  %v1046_v35 = vadd.f32 %v1030_v10, %v1012_v58  ;;  %v1047_v53 = vadd.f32 %v1031_v19, %v1013_v14  ;;  %v1064_v39 = vmul.f32 %v3972_v27, %v3187_v60  ;;  %v4019_v43 = vld [vmem:[#allocation82_spill] sm:$0xff] }
  0xe1   : > { %v1065_v28 = vmul.f32 %v3973_v37, %v3187_v60  ;;  %v1041_v17 = vmul.f32 %v4017_v44, %v1029_v15  ;;  %v1042_v12 = vmul.f32 %v4018_v51, %v1029_v15  ;;  %v1043_v40 = vmul.f32 %v4019_v43, %v1029_v15 }
  0xe2   : > { %v996_v45 = vadd.f32 %v995_v29, %v981_v42  ;;  %v1044_v41 = vmul.f32 %v4020_v59, %v1029_v15  ;;  %v1045_v32 = vmul.f32 %v4021_v0, %v1029_v15  ;;  %v1048_v63 = vadd.f32 %v1032_v24, %v1014_v2 }
  0xe3   : > { %v1066_v58 = vmul.f32 %v3974_v22, %v3187_v60  ;;  %v1049_v10 = vadd.f32 %v1033_v54, %v1015_v47  ;;  %v1050_v19 = vadd.f32 %v1034_v50, %v1016_v25  ;;  %v1051_v37 = vadd.f32 %v1035_v46, %v1017_v8 }
  0xe4   : > { %v997_v14 = vadd.f32 %v996_v45, %v982_v4  ;;  %v1052_v42 = vadd.f32 %v1036_v49, %v1018_v7  ;;  %v1067_v29 = vmul.f32 %v3975_v48, %v3187_v60  ;;  %v1080_v51 = vadd.f32 %v1064_v39, %v1046_v35 }
  0xe5   : > { %v1081_v44 = vadd.f32 %v1065_v28, %v1047_v53  ;;  %v1053_v27 = vadd.f32 %v1037_v36, %v1019_v6  ;;  %v1054_v59 = vadd.f32 %v1038_v30, %v1020_v11  ;;  %v1055_v56 = vadd.f32 %v1039_v16, %v1021_v34  ;;  %v4023_v6 = vld [vmem:[#allocation90_spill] sm:$0xff]  ;;  %v4028_v30 = vld [vmem:[#allocation95_spill] sm:$0xff] }
  0xe6   : > { %v998_v43 = vadd.f32 %v997_v14, %v983_v55  ;;  %v1056_v15 = vadd.f32 %v1040_v13, %v1022_v38  ;;  %v1068_v2 = vmul.f32 %v3976_v26, %v3187_v60  ;;  %v1082_v24 = vadd.f32 %v1066_v58, %v1048_v63 }
  0xe7   : > { %v3248_v0 = vstv %s3227_s16  ;;  %v1057_v46 = vadd.f32 %v1041_v17, %v1023_v61  ;;  %v1058_v49 = vadd.f32 %v1042_v12, %v1024_v5  ;;  %v1059_v4 = vadd.f32 %v1043_v40, %v1025_v9  ;;  %v4022_v9 = vld [vmem:[#allocation89_spill] sm:$0xff] }
  0xe8   : > { %v999_v50 = vadd.f32 %v998_v43, %v3195_v1  ;;  %v1069_v39 = vmul.f32 %v3977_v23, %v3187_v60  ;;  %v1083_v28 = vadd.f32 %v1067_v29, %v1049_v10  ;;  %v1098_v53 = vadd.f32 %v3248_v0, %v1080_v51  ;;  %v4026_v17 = vld [vmem:[#allocation93_spill] sm:$0xff] }
  0xe9   : > { %v1099_v36 = vadd.f32 %v3248_v0, %v1081_v44  ;;  %v1060_v34 = vadd.f32 %v1044_v41, %v1026_v18  ;;  %v1061_v47 = vadd.f32 %v1045_v32, %v1027_v33  ;;  %v1070_v25 = vmul.f32 %v3978_v57, %v3187_v60  ;;  %v4024_v41 = vld [vmem:[#allocation91_spill] sm:$0xff]  ;;  %v4025_v18 = vld [vmem:[#allocation92_spill] sm:$0xff] }
  0xea   : > { %v1000_v55 = vadd.f32 %v999_v50, %v3198_v62  ;;  %v1071_v1 = vmul.f32 %v3979_v31, %v3187_v60  ;;  %v1072_v12 = vmul.f32 %v4022_v9, %v3187_v60  ;;  %v1084_v8 = vadd.f32 %v1068_v2, %v1050_v19 }
  0xeb   : > { %v1100_v7 = vadd.f32 %v3248_v0, %v1082_v24  ;;  %v1073_v11 = vmul.f32 %v4023_v6, %v3187_v60  ;;  %v1074_v32 = vmul.f32 %v4024_v41, %v3187_v60  ;;  %v1075_v62 = vmul.f32 %v4025_v18, %v3187_v60 }
  0xec   : > { %v1001_v51 = vadd.f32 %v1000_v55, %v3201_v21  ;;  %v1085_v33 = vadd.f32 %v1069_v39, %v1051_v37  ;;  %v1101_v38 = vadd.f32 %v3248_v0, %v1083_v28  ;;  %v1115_v61 = vmax.f32 %v1098_v53, 0.0  ;;  %v4027_v21 = vld [vmem:[#allocation94_spill] sm:$0xff] }
  0xed   : > { %v1116_v45 = vmax.f32 %v1099_v36, 0.0  ;;  %v1076_v44 = vmul.f32 %v4026_v17, %v3187_v60  ;;  %v1077_v54 = vmul.f32 %v4027_v21, %v3187_v60  ;;  %v1078_v16 = vmul.f32 %v4028_v30, %v3187_v60  ;;  %v4029_v36 = vld [vmem:[#allocation38_spill] sm:$0xff] }
  0xee   : > { %v1002_v5 = vrot.slane %v1001_v51, 4  ;;  %v1079_v63 = vmul.f32 %v3040_v20, %v3187_v60  ;;  %v1086_v13 = vadd.f32 %v1070_v25, %v1052_v42  ;;  %v1102_v37 = vadd.f32 %v3248_v0, %v1084_v8  ;;  %v4030_v8 = vld [vmem:[#allocation40_spill] sm:$0xff] }
  0xef   : > { %v1117_v35 = vmax.f32 %v1100_v7, 0.0  ;;  %v1087_v40 = vadd.f32 %v1071_v1, %v1053_v27  ;;  %v1088_v58 = vadd.f32 %v1072_v12, %v1054_v59  ;;  %v1089_v14 = vadd.f32 %v1073_v11, %v1055_v56  ;;  %v954_v11 = vld [vmem:[%s2707_s4] sm:$0x1] }
  0xf0   : > { %v1003_v43 = vadd.f32 %v1002_v5, %v1001_v51  ;;  %v1103_v10 = vadd.f32 %v3248_v0, %v1085_v33  ;;  %v1118_v19 = vmax.f32 %v1101_v38, 0.0  ;;  %v1131_v29 = vmul.f32 %v3982_v52, %v1115_v61 }
  0xf1   : > { %v1132_v2 = vmul.f32 %v3983_v3, %v1116_v45  ;;  %v1090_v50 = vadd.f32 %v1074_v32, %v1056_v15  ;;  %v1091_v39 = vadd.f32 %v1075_v62, %v1057_v46  ;;  %v1092_v28 = vadd.f32 %v1076_v44, %v1058_v49  ;;  %v4031_v32 = vld [vmem:[#allocation42_spill] sm:$0xff] }
  0xf2   : > { %v1004_v24 = vrot.slane %v1003_v43, 2  ;;  %v1093_v60 = vadd.f32 %v1077_v54, %v1059_v4  ;;  %v1104_v42 = vadd.f32 %v3248_v0, %v1086_v13  ;;  %v1119_v53 = vmax.f32 %v1102_v37, 0.0  ;;  %v4032_v54 = vld [vmem:[#allocation44_spill] sm:$0xff] }
  0xf3   : > { %v1133_v27 = vmul.f32 %v4029_v36, %v1117_v35  ;;  %v1094_v56 = vadd.f32 %v1078_v16, %v1060_v34  ;;  %v1095_v55 = vadd.f32 %v1079_v63, %v1061_v47  ;;  %v1105_v25 = vadd.f32 %v3248_v0, %v1087_v40 }
  0xf4   : > { %v1005_v59 = vadd.f32 %v1004_v24, %v1003_v43  ;;  %v1106_v1 = vadd.f32 %v3248_v0, %v1088_v58  ;;  %v1120_v12 = vmax.f32 %v1103_v10, 0.0  ;;  %v1134_v7 = vmul.f32 %v4030_v8, %v1118_v19  ;;  %v4033_v58 = vld [vmem:[#allocation47_spill] sm:$0xff]  ;;  %v4034_v24 = vld [vmem:[#allocation50_spill] sm:$0xff] }
  0xf5   : > { %v1147_v15 = vadd.f32 %v1132_v2, %v1131_v29  ;;  %v1107_v49 = vadd.f32 %v3248_v0, %v1089_v14  ;;  %v1108_v4 = vadd.f32 %v3248_v0, %v1090_v50  ;;  %v1109_v51 = vadd.f32 %v3248_v0, %v1091_v39 }
  0xf6   : > { %v1006_v46 = vrot.slane %v1005_v59, 1  ;;  %v1110_v34 = vadd.f32 %v3248_v0, %v1092_v28  ;;  %v1121_v47 = vmax.f32 %v1104_v42, 0.0  ;;  %v1135_v62 = vmul.f32 %v4031_v32, %v1119_v53  ;;  %v4035_v28 = vld [vmem:[#allocation52_spill] sm:$0xff]  ;;  %v4036_v53 = vld [vmem:[#allocation54_spill] sm:$0xff] }
  0xf7   : > { %v1148_v33 = vadd.f32 %v1147_v15, %v1133_v27  ;;  %v1111_v61 = vadd.f32 %v3248_v0, %v1093_v60  ;;  %v1112_v45 = vadd.f32 %v3248_v0, %v1094_v56  ;;  %v1113_v5 = vadd.f32 %v3248_v0, %v1095_v55  ;;  %v4038_v55 = vld [vmem:[#allocation57_spill] sm:$0xff]  ;;  %v4040_v15 = vld [vmem:[#allocation64_spill] sm:$0xff] }
  0xf8   : > { %v1007_v38 = vadd.f32 %v1006_v46, %v1005_v59  ;;  %v1122_v44 = vmax.f32 %v1105_v25, 0.0  ;;  %v1136_v16 = vmul.f32 %v4032_v54, %v1120_v12  ;;  %v1123_v37 = vmax.f32 %v1106_v1, 0.0  ;;  %v4037_v59 = vld [vmem:[#allocation56_spill] sm:$0xff]  ;;  %v4039_v12 = vld [vmem:[#allocation59_spill] sm:$0xff] }
  0xf9   : > { %v1149_v63 = vadd.f32 %v1148_v33, %v1134_v7  ;;  %v1124_v35 = vmax.f32 %v1107_v49, 0.0  ;;  %v1125_v43 = vmax.f32 %v1108_v4, 0.0  ;;  %v1126_v40 = vmax.f32 %v1109_v51, 0.0  ;;  %v4041_v49 = vld [vmem:[#allocation67_spill] sm:$0xff]  ;;  %v4042_v51 = vld [vmem:[#allocation69_spill] sm:$0xff]  ;;  %v4068_v54 = vld [vmem:[#allocation68_spill] sm:$0xff] }
  0xfa   : > { %v1008_v13 = vadd.f32 %v1007_v38, %v954_v11  ;;  %v1137_v14 = vmul.f32 %v4033_v58, %v1121_v47  ;;  %v1127_v19 = vmax.f32 %v1110_v34, 0.0  ;;  %v1128_v29 = vmax.f32 %v1111_v61, 0.0  ;;  %v3316_v47 = vld [vmem:[%s2681_s0] sm:$0xff]  ;;  %v3323_v61 = vld [vmem:[%s2681_s0 + $0x8] sm:$0xff]  ;;  %v4067_v58 = vld [vmem:[#allocation63_spill] sm:$0xff] }
  0xfb   : > { %v1150_v10 = vadd.f32 %v1149_v63, %v1135_v62  ;;  %v1129_v0 = vmax.f32 %v1112_v45, 0.0  ;;  %v1130_v2 = vmax.f32 %v1113_v5, 0.0  ;;  %v1138_v50 = vmul.f32 %v4034_v24, %v1122_v44  ;;  %4043 = vst [vmem:[#allocation66_spill] sm:$0xff] %v3316_v47  ;;  %v3327_v5 = vld [vmem:[%s2681_s0 + $0x10] sm:$0xff] }
  0xfc   : > { %1009 = vst [vmem:[%s2707_s4] sm:$0x1] %v1008_v13  ;;  %v1139_v60 = vmul.f32 %v4035_v28, %v1123_v37  ;;  %v1171_v42 = vstv %s1953_s11  ;;  %v1140_v27 = vmul.f32 %v4036_v53, %v1124_v35  ;;  %v1141_v56 = vmul.f32 %v4037_v59, %v1125_v43  ;;  %v4047_v13 = vld [vmem:[#allocation45_spill] sm:$0xff]  ;;  %v4048_v43 = vld [vmem:[#allocation48_spill] sm:$0xff]  ;;  %s4101_s11 = sld [smem:[#allocation99_spill]] (!%p1961_p7) }
  0xfd   : > { %v1151_v39 = vadd.f32 %v1150_v10, %v1136_v16  ;;  %v1142_v25 = vmul.f32 %v4038_v55, %v1126_v40  ;;  %v1143_v7 = vmul.f32 %v4039_v12, %v1127_v19  ;;  %v1144_v46 = vmul.f32 %v4040_v15, %v1128_v29  ;;  %4044 = vst [vmem:[#allocation71_spill] sm:$0xff] %v3323_v61  ;;  %v3331_v16 = vld [vmem:[%s2681_s0 + $0x18] sm:$0xff]  ;;  %v3355_v55 = vld [vmem:[%s2681_s0 + $0x90] sm:$0xff] }
  0xfe   : > { %v3310_v4 = vmul.f32 %v4041_v49, %v1129_v0  ;;  %v3313_v11 = vmul.f32 %v4042_v51, %v1130_v2  ;;  %v1172_v62 = vmul.f32 %v3316_v47, %v1171_v42  ;;  %v1189_v33 = vstv %s3297_s21  ;;  %4045 = vst [vmem:[#allocation75_spill] sm:$0xff] %v3327_v5  ;;  %v4050_v19 = vld [vmem:[#allocation55_spill] sm:$0xff]  ;;  %v4051_v0 = vld [vmem:[#allocation60_spill] sm:$0xff]  ;;  %v3345_v51 = vld [vmem:[%s2681_s0 + $0x88] sm:$0xff] }
  0xff   : > { %v1152_v1 = vadd.f32 %v1151_v39, %v1137_v14  ;;  %v3320_v38 = vstv %s1955_s17  ;;  %v1173_v45 = vmul.f32 %v3323_v61, %v1171_v42  ;;  %v1174_v44 = vmul.f32 %v3327_v5, %v1171_v42  ;;  %4046 = vst [vmem:[#allocation79_spill] sm:$0xff] %v3331_v16  ;;  %v4049_v14 = vld [vmem:[#allocation51_spill] sm:$0xff] }
 0x100   : > { %v1175_v63 = vmul.f32 %v3331_v16, %v1171_v42  ;;  %v1176_v37 = vmul.f32 %v1171_v42, %v4047_v13  ;;  %v1177_v40 = vmul.f32 %v1171_v42, %v4048_v43  ;;  %v1178_v10 = vmul.f32 %v1171_v42, %v4049_v14  ;;  %4054 = vst [vmem:[#allocation87_spill] sm:$0xff] %v3345_v51  ;;  %v4056_v16 = vld [vmem:[#allocation72_spill] sm:$0xff] }
 0x101   : > { %v1153_v34 = vadd.f32 %v1152_v1, %v1138_v50  ;;  %v1179_v29 = vmul.f32 %v1171_v42, %v4050_v19  ;;  %v1180_v2 = vmul.f32 %v1171_v42, %v4051_v0  ;;  %v4052_v50 = vld [vmem:[#allocation65_spill] sm:$0xff]  ;;  %v3341_v1 = vld [vmem:[%s2681_s0 + $0x80] sm:$0xff]  ;;  %v1191_v13 = vmul.f32 %v3345_v51, %v1189_v33  ;;  %4061 = vst [vmem:[#allocation36_spill] sm:$0xff] %v3355_v55 }
 0x102   : > { %v1181_v39 = vmul.f32 %v1171_v42, %v4052_v50  ;;  %4053 = vst [vmem:[#allocation83_spill] sm:$0xff] %v3341_v1  ;;  %v1190_v5 = vmul.f32 %v3341_v1, %v1189_v33  ;;  %v1183_v61 = vmul.f32 %v1171_v42, %v4056_v16  ;;  %v4057_v14 = vld [vmem:[#allocation76_spill] sm:$0xff]  ;;  %v4060_v50 = vld [vmem:[#allocation86_spill] sm:$0xff]  ;;  %v1192_v1 = vmul.f32 %v3355_v55, %v1189_v33 }
 0x103   : > { %v1154_v35 = vadd.f32 %v1153_v34, %v1139_v60  ;;  %v4055_v34 = vld [vmem:[#allocation70_spill] sm:$0xff]  ;;  %v1184_v47 = vmul.f32 %v1171_v42, %v4057_v14  ;;  %v4058_v19 = vld [vmem:[#allocation80_spill] sm:$0xff]  ;;  %v1187_v12 = vmul.f32 %v1171_v42, %v4060_v50  ;;  %v1207_v28 = vadd.f32 %v1191_v13, %v1173_v45 }
 0x104   : > { %v1182_v43 = vmul.f32 %v1171_v42, %v4055_v34  ;;  %v1185_v49 = vmul.f32 %v1171_v42, %v4058_v19  ;;  %v4059_v0 = vld [vmem:[#allocation84_spill] sm:$0xff]  ;;  %v4063_v34 = vld [vmem:[#allocation53_spill] sm:$0xff]  ;;  %v4064_v16 = vld [vmem:[#allocation58_spill] sm:$0xff]  ;;  %v1206_v14 = vadd.f32 %v1190_v5, %v1172_v62  ;;  %v1196_v55 = vmul.f32 %v4067_v58, %v1189_v33 }
 0x105   : > { %v1155_v60 = vadd.f32 %v1154_v35, %v1140_v27  ;;  %v1186_v15 = vmul.f32 %v1171_v42, %v4059_v0  ;;  %v4062_v27 = vld [vmem:[#allocation49_spill] sm:$0xff]  ;;  %v1194_v59 = vmul.f32 %v4063_v34, %v1189_v33  ;;  %v1195_v53 = vmul.f32 %v4064_v16, %v1189_v33  ;;  %v4066_v42 = vld [vmem:[#allocation62_spill] sm:$0xff] }
 0x106   : > { %v1193_v35 = vmul.f32 %v4062_v27, %v1189_v33  ;;  %v4065_v19 = vld [vmem:[#allocation61_spill] sm:$0xff]  ;;  %v1225_v50 = vmul.f32 %v4066_v42, %v3320_v38  ;;  %v1197_v32 = vmul.f32 %v4068_v54, %v1189_v33  ;;  %v4070_v27 = vld [vmem:[#allocation74_spill] sm:$0xff]  ;;  %v1208_v16 = vadd.f32 %v1192_v1, %v1174_v44  ;;  %v4076_v1 = vld [vmem:[#allocation88_spill] sm:$0xff] }
 0x107   : > { %v1156_v51 = vadd.f32 %v1155_v60, %v1141_v56  ;;  %v1224_v0 = vmul.f32 %v4065_v19, %v3320_v38  ;;  %v4069_v56 = vld [vmem:[#allocation73_spill] sm:$0xff]  ;;  %v1199_v8 = vmul.f32 %v4070_v27, %v1189_v33  ;;  %v1226_v62 = vmul.f32 %v3974_v22, %v3320_v38  ;;  %v4072_v5 = vld [vmem:[#allocation78_spill] sm:$0xff] }
 0x108   : > { %v1198_v60 = vmul.f32 %v4069_v56, %v1189_v33  ;;  %v4071_v34 = vld [vmem:[#allocation77_spill] sm:$0xff]  ;;  %v1201_v13 = vmul.f32 %v4072_v5, %v1189_v33  ;;  %v1209_v42 = vadd.f32 %v1193_v35, %v1175_v63  ;;  %v1227_v54 = vmul.f32 %v3975_v48, %v3320_v38 }
 0x109   : > { %v1157_v24 = vadd.f32 %v1156_v51, %v1142_v25  ;;  %v1200_v36 = vmul.f32 %v4071_v34, %v1189_v33  ;;  %v4073_v19 = vld [vmem:[#allocation81_spill] sm:$0xff]  ;;  %v4074_v51 = vld [vmem:[#allocation82_spill] sm:$0xff]  ;;  %v1240_v56 = vadd.f32 %v1224_v0, %v1206_v14  ;;  %v1241_v27 = vadd.f32 %v1225_v50, %v1207_v28 }
 0x10a   : > { %v1202_v25 = vmul.f32 %v4073_v19, %v1189_v33  ;;  %v1203_v58 = vmul.f32 %v4074_v51, %v1189_v33  ;;  %v4075_v34 = vld [vmem:[#allocation85_spill] sm:$0xff]  ;;  %v1205_v30 = vmul.f32 %v4076_v1, %v1189_v33  ;;  %v1210_v22 = vadd.f32 %v1194_v59, %v1176_v37  ;;  %v1114_v1 = vld [vmem:[%s2707_s4 + $0x1] sm:$0x1] }
 0x10b   : > { %v1158_v45 = vadd.f32 %v1157_v24, %v1143_v7  ;;  %v1204_v44 = vmul.f32 %v4075_v34, %v1189_v33  ;;  %v1211_v21 = vadd.f32 %v1195_v53, %v1177_v40  ;;  %v1228_v24 = vmul.f32 %v3976_v26, %v3320_v38 }
 0x10c   : > { %v1242_v7 = vadd.f32 %v1226_v62, %v1208_v16  ;;  %v3384_v5 = vstv %s3358_s8  ;;  %v1212_v35 = vadd.f32 %v1196_v55, %v1178_v10  ;;  %v1213_v19 = vadd.f32 %v1197_v32, %v1179_v29  ;;  %v4077_v16 = vld [vmem:[#allocation94_spill] sm:$0xff]  ;;  %s4102_s8 = sld [smem:[#allocation98_spill]] (!%p1961_p7) }
 0x10d   : > { %v1159_v20 = vadd.f32 %v1158_v45, %v1144_v46  ;;  %v1214_v48 = vadd.f32 %v1198_v60, %v1180_v2  ;;  %v1229_v28 = vmul.f32 %v3977_v23, %v3320_v38  ;;  %v1243_v46 = vadd.f32 %v1227_v54, %v1209_v42  ;;  %v4078_v45 = vld [vmem:[#allocation95_spill] sm:$0xff]  ;;  %v4080_v42 = vld [vmem:[#allocation38_spill] sm:$0xff] }
 0x10e   : > { %v1258_v14 = vadd.f32 %v3384_v5, %v1240_v56  ;;  %v1259_v59 = vadd.f32 %v3384_v5, %v1241_v27  ;;  %v1215_v33 = vadd.f32 %v1199_v8, %v1181_v39  ;;  %v1216_v26 = vadd.f32 %v1200_v36, %v1182_v43 }
 0x10f   : > { %v1160_v63 = vadd.f32 %v1159_v20, %v3310_v4  ;;  %v1217_v37 = vadd.f32 %v1201_v13, %v1183_v61  ;;  %v1218_v40 = vadd.f32 %v1202_v25, %v1184_v47  ;;  %v1230_v20 = vmul.f32 %v3978_v57, %v3320_v38 }
 0x110   : > { %v1244_v55 = vadd.f32 %v1228_v24, %v1210_v22  ;;  %v1260_v32 = vadd.f32 %v3384_v5, %v1242_v7  ;;  %v1219_v10 = vadd.f32 %v1203_v58, %v1185_v49  ;;  %v1220_v23 = vadd.f32 %v1204_v44, %v1186_v15  ;;  %v4081_v7 = vld [vmem:[#allocation40_spill] sm:$0xff] }
 0x111   : > { %v1161_v53 = vadd.f32 %v1160_v63, %v3313_v11  ;;  %v1231_v29 = vmul.f32 %v3979_v31, %v3320_v38  ;;  %v1245_v2 = vadd.f32 %v1229_v28, %v1211_v21  ;;  %v1261_v0 = vadd.f32 %v3384_v5, %v1243_v46 }
 0x112   : > { %v1275_v11 = vmax.f32 %v1258_v14, 0.0  ;;  %v1276_v8 = vmax.f32 %v1259_v59, 0.0  ;;  %v1221_v61 = vadd.f32 %v1205_v30, %v1187_v12  ;;  %v1232_v47 = vmul.f32 %v4022_v9, %v3320_v38  ;;  %v4082_v59 = vld [vmem:[#allocation42_spill] sm:$0xff] }
 0x113   : > { %v1162_v4 = vrot.slane %v1161_v53, 4  ;;  %v1233_v57 = vmul.f32 %v4023_v6, %v3320_v38  ;;  %v1234_v49 = vmul.f32 %v4024_v41, %v3320_v38  ;;  %v1246_v15 = vadd.f32 %v1230_v20, %v1212_v35 }
 0x114   : > { %v1262_v39 = vadd.f32 %v3384_v5, %v1244_v55  ;;  %v1277_v31 = vmax.f32 %v1260_v32, 0.0  ;;  %v1235_v43 = vmul.f32 %v4025_v18, %v3320_v38  ;;  %v1236_v30 = vmul.f32 %v4026_v17, %v3320_v38  ;;  %v4079_v18 = vld [vmem:[#allocation96_spill] sm:$0xff] }
 0x115   : > { %v1163_v36 = vadd.f32 %v1162_v4, %v1161_v53  ;;  %v1247_v12 = vadd.f32 %v1231_v29, %v1213_v19  ;;  %v1263_v9 = vadd.f32 %v3384_v5, %v1245_v2  ;;  %v1278_v50 = vmax.f32 %v1261_v0, 0.0  ;;  %v4083_v32 = vld [vmem:[#allocation44_spill] sm:$0xff] }
 0x116   : > { %v1291_v6 = vmul.f32 %v3982_v52, %v1275_v11  ;;  %v1292_v41 = vmul.f32 %v3983_v3, %v1276_v8  ;;  %v1237_v62 = vmul.f32 %v4077_v16, %v3320_v38  ;;  %v1238_v13 = vmul.f32 %v4078_v45, %v3320_v38  ;;  %v4084_v8 = vld [vmem:[#allocation47_spill] sm:$0xff]  ;;  %v4087_v16 = vld [vmem:[#allocation54_spill] sm:$0xff] }
 0x117   : > { %v1164_v21 = vrot.slane %v1163_v36, 2  ;;  %v1239_v25 = vmul.f32 %v4079_v18, %v3320_v38  ;;  %v1248_v17 = vadd.f32 %v1232_v47, %v1214_v48  ;;  %v1264_v51 = vadd.f32 %v3384_v5, %v1246_v15 }
 0x118   : > { %v1279_v58 = vmax.f32 %v1262_v39, 0.0  ;;  %v1293_v54 = vmul.f32 %v4080_v42, %v1277_v31  ;;  %v1249_v27 = vadd.f32 %v1233_v57, %v1215_v33  ;;  %v1250_v34 = vadd.f32 %v1234_v49, %v1216_v26  ;;  %v4085_v49 = vld [vmem:[#allocation50_spill] sm:$0xff] }
 0x119   : > { %v1165_v60 = vadd.f32 %v1164_v21, %v1163_v36  ;;  %v1251_v44 = vadd.f32 %v1235_v43, %v1217_v37  ;;  %v1265_v22 = vadd.f32 %v3384_v5, %v1247_v12  ;;  %v1280_v24 = vmax.f32 %v1263_v9, 0.0  ;;  %v4086_v9 = vld [vmem:[#allocation52_spill] sm:$0xff] }
 0x11a   : > { %v1294_v63 = vmul.f32 %v4081_v7, %v1278_v50  ;;  %v1307_v35 = vadd.f32 %v1292_v41, %v1291_v6  ;;  %v1252_v38 = vadd.f32 %v1236_v30, %v1218_v40  ;;  %v1253_v48 = vadd.f32 %v1237_v62, %v1219_v10 }
 0x11b   : > { %v1166_v56 = vrot.slane %v1165_v60, 1  ;;  %v1254_v28 = vadd.f32 %v1238_v13, %v1220_v23  ;;  %v1266_v46 = vadd.f32 %v3384_v5, %v1248_v17  ;;  %v1281_v14 = vmax.f32 %v1264_v51, 0.0  ;;  %v4088_v13 = vld [vmem:[#allocation56_spill] sm:$0xff]  ;;  %v4090_v51 = vld [vmem:[#allocation59_spill] sm:$0xff] }
 0x11c   : > { %v1295_v53 = vmul.f32 %v4082_v59, %v1279_v58  ;;  %v1308_v33 = vadd.f32 %v1307_v35, %v1293_v54  ;;  %v1255_v37 = vadd.f32 %v1239_v25, %v1221_v61  ;;  %v1267_v20 = vadd.f32 %v3384_v5, %v1249_v27  ;;  %v4089_v25 = vld [vmem:[#allocation57_spill] sm:$0xff]  ;;  %v4091_v54 = vld [vmem:[#allocation64_spill] sm:$0xff]  ;;  %v4092_v27 = vld [vmem:[#allocation67_spill] sm:$0xff] }
 0x11d   : > { %v1167_v19 = vadd.f32 %v1166_v56, %v1165_v60  ;;  %v1282_v55 = vmax.f32 %v1265_v22, 0.0  ;;  %v1296_v4 = vmul.f32 %v4083_v32, %v1280_v24  ;;  %v1268_v40 = vadd.f32 %v3384_v5, %v1250_v34  ;;  %v4094_v24 = vld [vmem:[#allocation71_spill] sm:$0xff] }
 0x11e   : > { %v1309_v29 = vadd.f32 %v1308_v33, %v1294_v63  ;;  %v1269_v10 = vadd.f32 %v3384_v5, %v1251_v44  ;;  %v1270_v23 = vadd.f32 %v3384_v5, %v1252_v38  ;;  %v1271_v2 = vadd.f32 %v3384_v5, %v1253_v48  ;;  %v4095_v35 = vld [vmem:[#allocation83_spill] sm:$0xff] }
 0x11f   : > { %v1168_v26 = vadd.f32 %v1167_v19, %v1114_v1  ;;  %v1272_v0 = vadd.f32 %v3384_v5, %v1254_v28  ;;  %v1283_v11 = vmax.f32 %v1266_v46, 0.0  ;;  %v1297_v36 = vmul.f32 %v4084_v8, %v1281_v14  ;;  %v4093_v1 = vld [vmem:[#allocation66_spill] sm:$0xff]  ;;  %v4096_v38 = vld [vmem:[#allocation87_spill] sm:$0xff]  ;;  %v4097_v28 = vld [vmem:[#allocation69_spill] sm:$0xff] }
 0x120   : > { %v1310_v61 = vadd.f32 %v1309_v29, %v1295_v53  ;;  %v1273_v47 = vadd.f32 %v3384_v5, %v1255_v37  ;;  %v1284_v57 = vmax.f32 %v1267_v20, 0.0  ;;  %v1298_v15 = vmul.f32 %v4085_v49, %v1282_v55  ;;  %v4098_v53 = vld [vmem:[#allocation75_spill] sm:$0xff]  ;;  %v2137_v55 = vld [vmem:[%s2681_s0 + $0x20] sm:$0xff]  ;;  %v2138_v29 = vld [vmem:[%s2681_s0 + $0x28] sm:$0xff] }
 0x121   : > { %1169 = vst [vmem:[%s2707_s4 + $0x1] sm:$0x1] %v1168_v26  ;;  %v1285_v31 = vmax.f32 %v1268_v40, 0.0  ;;  %v1286_v21 = vmax.f32 %v1269_v10, 0.0  ;;  %v1287_v43 = vmax.f32 %v1270_v23, 0.0  ;;  %v1288_v30 = vmax.f32 %v1271_v2, 0.0 }
 0x122   : > { %v1311_v39 = vadd.f32 %v1310_v61, %v1296_v4  ;;  %v1289_v12 = vmax.f32 %v1272_v0, 0.0  ;;  %v1299_v50 = vmul.f32 %v4086_v9, %v1283_v11  ;;  %v3437_v41 = vstv %s1957_s24  ;;  %v4099_v37 = vld [vmem:[#allocation79_spill] sm:$0xff]  ;;  %v4100_v10 = vld [vmem:[#allocation36_spill] sm:$0xff]  ;;  %v2139_v0 = vld [vmem:[%s2681_s0 + $0x30] sm:$0xff] }
 0x123   : > { %v1290_v60 = vmax.f32 %v1273_v47, 0.0  ;;  %v1300_v62 = vmul.f32 %v4087_v16, %v1284_v57  ;;  %v3440_v5 = vstv %s1958_s18  ;;  %v1301_v18 = vmul.f32 %v4088_v13, %v1285_v31  ;;  %v2141_v47 = vld [vmem:[%s2681_s0 + $0x98] sm:$0xff]  ;;  %v2142_v31 = vld [vmem:[%s2681_s0 + $0x100] sm:$0xff] }
 0x124   : > { %v1312_v6 = vadd.f32 %v1311_v39, %v1297_v36  ;;  %v1302_v17 = vmul.f32 %v4089_v25, %v1286_v21  ;;  %v1303_v58 = vmul.f32 %v4090_v51, %v1287_v43  ;;  %v1304_v56 = vmul.f32 %v4091_v54, %v1288_v30  ;;  %v2140_v36 = vld [vmem:[%s2681_s0 + $0x38] sm:$0xff]  ;;  %v2143_v43 = vld [vmem:[%s2681_s0 + $0x108] sm:$0xff] }
 0x125   : > { %v3447_v34 = vmul.f32 %v4092_v27, %v1289_v12  ;;  %v1332_v22 = vmul.f32 %v4093_v1, %v3437_v41  ;;  %v1333_v63 = vmul.f32 %v4094_v24, %v3437_v41  ;;  %v1350_v19 = vmul.f32 %v4095_v35, %v3440_v5 }
 0x126   : > { %v1313_v45 = vadd.f32 %v1312_v6, %v1298_v15  ;;  %v1351_v48 = vmul.f32 %v4096_v38, %v3440_v5  ;;  %v3458_v46 = vmul.f32 %v4097_v28, %v1290_v60  ;;  %v1334_v33 = vmul.f32 %v4098_v53, %v3437_v41  ;;  %v2145_v60 = vld [vmem:[%s2681_s0 + $0x48] sm:$0xff]  ;;  %v2150_v38 = vld [vmem:[%s2681_s0 + $0x60] sm:$0xff] }
 0x127   : > { %v3462_v26 = vstv %s1959_s15  ;;  %v1335_v20 = vmul.f32 %v4099_v37, %v3437_v41  ;;  %v1336_v4 = vmul.f32 %v2137_v55, %v3437_v41  ;;  %v1337_v40 = vmul.f32 %v2138_v29, %v3437_v41  ;;  %v2152_v37 = vld [vmem:[%s2681_s0 + $0xa8] sm:$0xff]  ;;  %v2153_v29 = vld [vmem:[%s2681_s0 + $0x118] sm:$0xff] }
 0x128   : > { %v1314_v44 = vadd.f32 %v1313_v45, %v1299_v50  ;;  %v1352_v23 = vmul.f32 %v4100_v10, %v3440_v5  ;;  %v3476_v11 = vmul.f32 %v2139_v0, %v3437_v41  ;;  %v3480_v61 = vmul.f32 %v2140_v36, %v3437_v41  ;;  %v2144_v50 = vld [vmem:[%s2681_s0 + $0x40] sm:$0xff]  ;;  %v2146_v45 = vld [vmem:[%s2681_s0 + $0x50] sm:$0xff] }
 0x129   : > { %v1353_v57 = vmul.f32 %v2141_v47, %v3440_v5  ;;  %v1366_v15 = vadd.f32 %v1350_v19, %v1332_v22  ;;  %v1367_v39 = vadd.f32 %v1351_v48, %v1333_v63  ;;  %v1384_v21 = vmul.f32 %v2142_v31, %v3462_v26  ;;  %v2149_v63 = vld [vmem:[%s2681_s0 + $0x110] sm:$0xff]  ;;  %v2155_v47 = vld [vmem:[%s2681_s0 + $0x78] sm:$0xff] }
 0x12a   : > { %v1315_v14 = vadd.f32 %v1314_v44, %v1300_v62  ;;  %v1385_v30 = vmul.f32 %v2143_v43, %v3462_v26  ;;  %v3490_v6 = vmul.f32 %v2144_v50, %v3437_v41  ;;  %v3494_v62 = vmul.f32 %v2145_v60, %v3437_v41  ;;  %v2147_v44 = vld [vmem:[%s2681_s0 + $0x58] sm:$0xff]  ;;  %v2154_v0 = vld [vmem:[%s2681_s0 + $0x70] sm:$0xff] }
 0x12b   : > { %v3502_v1 = vmul.f32 %v2147_v44, %v3437_v41  ;;  %v1368_v24 = vadd.f32 %v1352_v23, %v1334_v33  ;;  %v1386_v35 = vmul.f32 %v2149_v63, %v3462_v26  ;;  %v3510_v48 = vmul.f32 %v2150_v38, %v3437_v41  ;;  %v2160_v44 = vld [vmem:[%s2681_s0 + $0x128] sm:$0xff] }
 0x12c   : > { %v1316_v2 = vadd.f32 %v1315_v14, %v1301_v18  ;;  %v3498_v18 = vmul.f32 %v2146_v45, %v3437_v41  ;;  %v2151_v14 = vld [vmem:[%s2681_s0 + $0x68] sm:$0xff]  ;;  %v1355_v33 = vmul.f32 %v2152_v37, %v3440_v5  ;;  %v1369_v55 = vadd.f32 %v1353_v57, %v1335_v20  ;;  %v2156_v20 = vld [vmem:[%s2681_s0 + $0xb0] sm:$0xff] }
 0x12d   : > { %v3514_v53 = vmul.f32 %v2151_v14, %v3437_v41  ;;  %v1387_v10 = vmul.f32 %v2153_v29, %v3462_v26  ;;  %v1401_v23 = vadd.f32 %v1385_v30, %v1367_v39  ;;  %v3522_v36 = vmul.f32 %v2154_v0, %v3437_v41  ;;  %v2158_v30 = vld [vmem:[%s2681_s0 + $0xb8] sm:$0xff]  ;;  %v2161_v63 = vld [vmem:[%s2681_s0 + $0xc8] sm:$0xff] }
 0x12e   : > { %v1317_v12 = vadd.f32 %v1316_v2, %v1302_v17  ;;  %v2148_v17 = vld [vmem:[%s2681_s0 + $0xa0] sm:$0xff]  ;;  %v3526_v31 = vmul.f32 %v2155_v47, %v3437_v41  ;;  %v3529_v43 = vstv %s3464_s23  ;;  %v1356_v57 = vmul.f32 %v2156_v20, %v3440_v5  ;;  %v2163_v14 = vld [vmem:[%s2681_s0 + $0xd8] sm:$0xff] }
 0x12f   : > { %v1354_v22 = vmul.f32 %v2148_v17, %v3440_v5  ;;  %v1357_v50 = vmul.f32 %v2158_v30, %v3440_v5  ;;  %v2159_v41 = vld [vmem:[%s2681_s0 + $0xc0] sm:$0xff]  ;;  %v1371_v45 = vadd.f32 %v1355_v33, %v1337_v40  ;;  %v1403_v17 = vadd.f32 %v1387_v10, %v1369_v55  ;;  %v2164_v33 = vld [vmem:[%s2681_s0 + $0x130] sm:$0xff]  ;;  %v2166_v0 = vld [vmem:[%s2681_s0 + $0x138] sm:$0xff] }
 0x130   : > { %v1318_v19 = vadd.f32 %v1317_v12, %v1303_v58  ;;  %v1400_v58 = vadd.f32 %v1384_v21, %v1366_v15  ;;  %v2157_v15 = vld [vmem:[%s2681_s0 + $0x120] sm:$0xff]  ;;  %v1358_v60 = vmul.f32 %v2159_v41, %v3440_v5  ;;  %v1361_v40 = vmul.f32 %v2163_v14, %v3440_v5 }
 0x131   : > { %v1370_v12 = vadd.f32 %v1354_v22, %v1336_v4  ;;  %v1388_v39 = vmul.f32 %v2157_v15, %v3462_v26  ;;  %v1389_v4 = vmul.f32 %v2160_v44, %v3462_v26  ;;  %v1372_v37 = vadd.f32 %v1356_v57, %v3476_v11 }
 0x132   : > { %v1319_v2 = vadd.f32 %v1318_v19, %v1304_v56  ;;  %v1402_v56 = vadd.f32 %v1386_v35, %v1368_v24  ;;  %v1418_v22 = vadd.f32 %v3529_v43, %v1400_v58  ;;  %v1419_v24 = vadd.f32 %v3529_v43, %v1401_v23  ;;  %v2162_v19 = vld [vmem:[%s2681_s0 + $0xd0] sm:$0xff]  ;;  %v2165_v58 = vld [vmem:[%s2681_s0 + $0xe0] sm:$0xff] }
 0x133   : > { %v1359_v35 = vmul.f32 %v2161_v63, %v3440_v5  ;;  %v1360_v38 = vmul.f32 %v2162_v19, %v3440_v5  ;;  %v1390_v55 = vmul.f32 %v2164_v33, %v3462_v26  ;;  %v1404_v29 = vadd.f32 %v1388_v39, %v1370_v12  ;;  %v2167_v12 = vld [vmem:[%s2681_s0 + $0xe8] sm:$0xff]  ;;  %v2171_v33 = vld [vmem:[%s2681_s0 + $0xf8] sm:$0xff] }
 0x134   : > { %v1320_v21 = vadd.f32 %v1319_v2, %v3447_v34  ;;  %v1362_v23 = vmul.f32 %v2165_v58, %v3440_v5  ;;  %v1373_v2 = vadd.f32 %v1357_v50, %v3480_v61  ;;  %v1391_v47 = vmul.f32 %v2166_v0, %v3462_v26  ;;  %v2169_v61 = vld [vmem:[%s2681_s0 + $0x140] sm:$0xff]  ;;  %v2173_v0 = vld [vmem:[%s2681_s0 + $0x158] sm:$0xff] }
 0x135   : > { %v1405_v20 = vadd.f32 %v1389_v4, %v1371_v45  ;;  %v1421_v11 = vadd.f32 %v3529_v43, %v1403_v17  ;;  %v1435_v57 = vmax.f32 %v1418_v22, 0.0  ;;  %v1436_v15 = vmax.f32 %v1419_v24, 0.0  ;;  %v2170_v24 = vld [vmem:[%s2681_s0 + $0x148] sm:$0xff] }
 0x136   : > { %v1321_v34 = vadd.f32 %v1320_v21, %v3458_v46  ;;  %v1420_v46 = vadd.f32 %v3529_v43, %v1402_v56  ;;  %v1363_v39 = vmul.f32 %v2167_v12, %v3440_v5  ;;  %v2168_v56 = vld [vmem:[%s2681_s0 + $0xf0] sm:$0xff]  ;;  %v1374_v41 = vadd.f32 %v1358_v60, %v3490_v6  ;;  %v2174_v12 = vld [vmem:[%s2681_s0 + $0x160] sm:$0xff] }
 0x137   : > { %v1364_v30 = vmul.f32 %v2168_v56, %v3440_v5  ;;  %v1392_v50 = vmul.f32 %v2169_v61, %v3462_v26  ;;  %v1406_v44 = vadd.f32 %v1390_v55, %v1372_v37  ;;  %v1422_v45 = vadd.f32 %v3529_v43, %v1404_v29 }
 0x138   : > { %v1322_v10 = vrot.slane %v1321_v34, 4  ;;  %v1437_v4 = vmax.f32 %v1420_v46, 0.0  ;;  %v1375_v22 = vadd.f32 %v1359_v35, %v3494_v62  ;;  %v1407_v63 = vadd.f32 %v1391_v47, %v1373_v2  ;;  %v2172_v62 = vld [vmem:[%s2681_s0 + $0x150] sm:$0xff] }
 0x139   : > { %v1423_v19 = vadd.f32 %v3529_v43, %v1405_v20  ;;  %v1438_v6 = vmax.f32 %v1421_v11, 0.0  ;;  %v1451_v60 = vmul.f32 %v3982_v52, %v1435_v57  ;;  %v1452_v14 = vmul.f32 %v3983_v3, %v1436_v15 }
 0x13a   : > { %v1323_v21 = vadd.f32 %v1322_v10, %v1321_v34  ;;  %v1393_v34 = vmul.f32 %v2170_v24, %v3462_v26  ;;  %v1365_v55 = vmul.f32 %v2171_v33, %v3440_v5  ;;  %v1376_v29 = vadd.f32 %v1360_v38, %v3498_v18  ;;  %v1274_v5 = vld [vmem:[%s2707_s4 + $0x2] sm:$0x1] }
 0x13b   : > { %v1394_v35 = vmul.f32 %v2172_v62, %v3462_v26  ;;  %v1408_v46 = vadd.f32 %v1392_v50, %v1374_v41  ;;  %v1424_v10 = vadd.f32 %v3529_v43, %v1406_v44  ;;  %v1439_v58 = vmax.f32 %v1422_v45, 0.0 }
 0x13c   : > { %v1324_v17 = vrot.slane %v1323_v21, 2  ;;  %v1453_v2 = vmul.f32 %v4080_v42, %v1437_v4  ;;  %v1377_v3 = vadd.f32 %v1361_v40, %v3502_v1  ;;  %v1395_v47 = vmul.f32 %v2173_v0, %v3462_v26 }
 0x13d   : > { %v1409_v20 = vadd.f32 %v1393_v34, %v1375_v22  ;;  %v1425_v18 = vadd.f32 %v3529_v43, %v1407_v63  ;;  %v1440_v38 = vmax.f32 %v1423_v19, 0.0  ;;  %v1454_v11 = vmul.f32 %v4081_v7, %v1438_v6  ;;  %v2175_v7 = vld [vmem:[%s2681_s0 + $0x168] sm:$0xff]  ;;  %v2176_v34 = vld [vmem:[%s2681_s0 + $0x170] sm:$0xff] }
 0x13e   : > { %v1325_v37 = vadd.f32 %v1324_v17, %v1323_v21  ;;  %v1467_v57 = vadd.f32 %v1452_v14, %v1451_v60  ;;  %v1378_v21 = vadd.f32 %v1362_v23, %v3510_v48  ;;  %v1396_v42 = vmul.f32 %v2174_v12, %v3462_v26  ;;  %v2177_v14 = vld [vmem:[%s2681_s0 + $0x178] sm:$0xff] }
 0x13f   : > { %v1410_v1 = vadd.f32 %v1394_v35, %v1376_v29  ;;  %v1426_v40 = vadd.f32 %v3529_v43, %v1408_v46  ;;  %v1441_v56 = vmax.f32 %v1424_v10, 0.0  ;;  %v1455_v41 = vmul.f32 %v4082_v59, %v1439_v58 }
 0x140   : > { %v1326_v52 = vrot.slane %v1325_v37, 1  ;;  %v1468_v61 = vadd.f32 %v1467_v57, %v1453_v2  ;;  %v1379_v44 = vadd.f32 %v1363_v39, %v3514_v53  ;;  %v1397_v45 = vmul.f32 %v2175_v7, %v3462_v26 }
 0x141   : > { %v1411_v48 = vadd.f32 %v1395_v47, %v1377_v3  ;;  %v1427_v23 = vadd.f32 %v3529_v43, %v1409_v20  ;;  %v1442_v4 = vmax.f32 %v1425_v18, 0.0  ;;  %v1456_v17 = vmul.f32 %v4083_v32, %v1440_v38 }
 0x142   : > { %v1327_v15 = vadd.f32 %v1326_v52, %v1325_v37  ;;  %v1469_v22 = vadd.f32 %v1468_v61, %v1454_v11  ;;  %v1380_v24 = vadd.f32 %v1364_v30, %v3522_v36  ;;  %v1398_v59 = vmul.f32 %v2176_v34, %v3462_v26  ;;  %v1434_v61 = vld [vmem:[%s2707_s4 + $0x3] sm:$0x1] }
 0x143   : > { %v1412_v63 = vadd.f32 %v1396_v42, %v1378_v21  ;;  %v1428_v53 = vadd.f32 %v3529_v43, %v1410_v1  ;;  %v1443_v39 = vmax.f32 %v1426_v40, 0.0  ;;  %v1457_v19 = vmul.f32 %v4084_v8, %v1441_v56 }
 0x144   : > { %v1328_v50 = vadd.f32 %v1327_v15, %v1274_v5  ;;  %v1470_v6 = vadd.f32 %v1469_v22, %v1455_v41  ;;  %v1381_v60 = vadd.f32 %v1365_v55, %v3526_v31  ;;  %v1399_v37 = vmul.f32 %v2177_v14, %v3462_v26 }
 0x145   : > { %v1413_v32 = vadd.f32 %v1397_v45, %v1379_v44  ;;  %v1429_v33 = vadd.f32 %v3529_v43, %v1411_v48  ;;  %v1444_v29 = vmax.f32 %v1427_v23, 0.0  ;;  %v1458_v36 = vmul.f32 %v4085_v49, %v1442_v4 }
 0x146   : > { %1329 = vst [vmem:[%s2707_s4 + $0x2] sm:$0x1] %v1328_v50  ;;  %v1471_v30 = vadd.f32 %v1470_v6, %v1456_v17  ;;  %v1414_v62 = vadd.f32 %v1398_v59, %v1380_v24  ;;  %v1430_v35 = vadd.f32 %v3529_v43, %v1412_v63  ;;  %v1445_v46 = vmax.f32 %v1428_v53, 0.0 }
 0x147   : > { %v1459_v10 = vmul.f32 %v4086_v9, %v1443_v39  ;;  %v1415_v58 = vadd.f32 %v1399_v37, %v1381_v60  ;;  %v1431_v31 = vadd.f32 %v3529_v43, %v1413_v32  ;;  %v1446_v55 = vmax.f32 %v1429_v33, 0.0 }
 0x148   : > { %v1472_v8 = vadd.f32 %v1471_v30, %v1457_v19  ;;  %v1460_v26 = vmul.f32 %v4087_v16, %v1444_v29  ;;  %v1432_v52 = vadd.f32 %v3529_v43, %v1414_v62  ;;  %v1447_v3 = vmax.f32 %v1430_v35, 0.0 }
 0x149   : > { %v1461_v49 = vmul.f32 %v4088_v13, %v1445_v46  ;;  %v1433_v47 = vadd.f32 %v3529_v43, %v1415_v58  ;;  %v1448_v20 = vmax.f32 %v1431_v31, 0.0  ;;  %v1462_v5 = vmul.f32 %v4089_v25, %v1446_v55 }
 0x14a   : > { %v1473_v2 = vadd.f32 %v1472_v8, %v1458_v36  ;;  %v1449_v18 = vmax.f32 %v1432_v52, 0.0  ;;  %v1463_v38 = vmul.f32 %v4090_v51, %v1447_v3 }
 0x14b   : > { %v1450_v57 = vmax.f32 %v1433_v47, 0.0  ;;  %v1464_v16 = vmul.f32 %v4091_v54, %v1448_v20 }
 0x14c   : > { %v1474_v0 = vadd.f32 %v1473_v2, %v1459_v10  ;;  %v1465_v21 = vmul.f32 %v4092_v27, %v1449_v18 }
 0x14d   : > { %v1466_v12 = vmul.f32 %v4097_v28, %v1450_v57 }
 0x14e   : > { %v1475_v9 = vadd.f32 %v1474_v0, %v1460_v26 }
 0x150   : > { %v1476_v11 = vadd.f32 %v1475_v9, %v1461_v49 }
 0x152   : > { %v1477_v15 = vadd.f32 %v1476_v11, %v1462_v5 }
 0x154   : > { %v1478_v13 = vadd.f32 %v1477_v15, %v1463_v38 }
 0x156   : > { %v1479_v43 = vadd.f32 %v1478_v13, %v1464_v16 }
 0x158   : > { %v1480_v42 = vadd.f32 %v1479_v43, %v1465_v21 }
 0x15a   : > { %v1481_v1 = vadd.f32 %v1480_v42, %v1466_v12 }
 0x15c   : > { %v1482_v25 = vrot.slane %v1481_v1, 4 }
 0x15e   : > { %v1483_v40 = vadd.f32 %v1482_v25, %v1481_v1 }
 0x160   : > { %v1484_v56 = vrot.slane %v1483_v40, 2 }
 0x162   : > { %v1485_v41 = vadd.f32 %v1484_v56, %v1483_v40 }
 0x164   : > { %v1486_v51 = vrot.slane %v1485_v41, 1 }
 0x166   : > { %v1487_v50 = vadd.f32 %v1486_v51, %v1485_v41  ;;  %1493 = sbr.rel (%p1961_p7) target bundleno = 508 (0x1fc), region = 84 }
 0x168   : > { %v1488_v44 = vadd.f32 %v1487_v50, %v1434_v61 }
 0x16a   : > { %1489 = vst [vmem:[%s2707_s4 + $0x3] sm:$0x1] %v1488_v44 }
 0x16b   : > { %v1507_v54 = vld [vmem:[%s2705_s6] sm:$0x3f]  ;;  %vm1519_vm0 = vcmask 1045504   ;;  %vm1515_vm1 = vcmask 48128   ;;  %vm1552_vm2 = vcmask 1042432   ;;  %vm1548_vm3 = vcmask 23552  }
 0x16c   : > { %v1545_v27 = vld [vmem:[%s3736_s5] sm:$0xff]  ;;  %1966 = vmatpush.msk.msra.mxu2 %vm1519_vm0, %v1507_v54  ;;  %1962 = vmatpush.msk.msra.mxu0 %vm1519_vm0, %v1507_v54  ;;  %v2450_v23 = vmov 0  }
 0x16d   : > { %v1508_v28 = vld [vmem:[%s3734_s3] sm:$0xf]  ;;  %1967 = vmatmul.msk.f32.vlgmr.msra.gmra.mxu2 %vm1515_vm1, %v1545_v27  ;;  %2178 = vset.pattern.permute.xlu0 %v2450_v23 }
 0x16e   : > { %v1576_v7 = vld [vmem:[%s3738_s7] sm:$0xff]  ;;  %1963 = vmatmul.msk.f32.vlgmr.msra.gmra.mxu0 %vm1515_vm1, %v1508_v28 }
 0x16f   : > { %v1547_v45 = vld [vmem:[#allocation3] sm:$0x7]  ;;  %1579 = vperm.xlu0 %2178, %v1576_v7   ;;  %v1494_v17 = vld [vmem:[#allocation2] sm:$0x1] }
 0x170   : > { %v1546_v48 = vld [vmem:[%s4101_s11] sm:$0xff]  ;;  %1964 = vmatpush.msk.msra.mxu1 %vm1552_vm2, %v1547_v45  ;;  %2180 = vrsqrt.f32 %v1494_v17  ;;  %vm1502_vm4 = vweird.f32 %v1494_v17  ;;  %vm1495_vm7 = vcmp.gt.f32.partialorder %v1494_v17, 0.0 }
 0x171   : > { %1965 = vmatmul.msk.f32.vlgmr.msra.gmra.mxu1 %vm1548_vm3, %v1546_v48  ;;  %v1509_v4 = vld [vmem:[%s4102_s8] sm:$0xf] }
 0x172   : > { %v2179_v32 = vld [vmem:[#allocation2] ss:$0 sm:$0xff] }
 0x176   : > { %v2181_v22 = vpop.eup %2180 }
 0x177   : > { %1512 = vperm.xlu0 %2178, %v1509_v4   ;;  %v1497_v24 = vmul.f32 %v2181_v22, %v1494_v17  ;;  %vm1503_vm5 = vweird.f32 %v2181_v22 }
 0x178   : > { %vm1504_vm6 = vmor %vm1502_vm4, %vm1503_vm5 }
 0x179   : > { %v1498_v34 = vmul.f32 %v2181_v22, %v1497_v24 }
 0x17b   : > { %v1499_v63 = vmul.f32 0.5, %v1498_v34 }
 0x17d   : > { %v1500_v53 = vsub.f32 1.5, %v1499_v63 }
 0x17f   : > { %v1501_v19 = vmul.f32 %v2181_v22, %v1500_v53 }
 0x181   : > { %v1505_v37 = vsel %vm1504_vm6, %v2181_v22, %v1501_v19 }
 0x182   : > { %v1506_v29 = vsel %vm1495_vm7, %v1505_v37, 0.0 }
 0x183   : > { %v1611_v35 = vperm.slane %v1506_v29, 0 }
 0x1e1   : > { %v1580_v59 = vpop.permute.xlu0 %1579 }
 0x1e9   : > { %v1513_v39 = vpop.permute.xlu0 %1512 }
 0x1eb   : > { %v1540_v6 = vpop.f32.mrf.mxu0 }
 0x1ec   : > { %v1541_v60 = vadd.f32 %v1540_v6, %v1513_v39 }
 0x1ee   : > { %v1543_v14 = vmax.f32 %v1541_v60, 0.0  ;;  %v1573_v30 = vpop.f32.mrf.mxu1 }
 0x1f0   : > { %1544 = vst [vmem:[%s2709_s9] sm:$0xf] %v1543_v14  ;;  %v1602_v33 = vpop.f32.mrf.mxu2 }
 0x1f1   : > { %v1603_v36 = vadd.f32 %v1602_v33, %v1580_v59 }
 0x1f3   : > { %v1608_v62 = vmul.f32 %v2179_v32, %v1603_v36 }
 0x1f5   : > { %v1609_v46 = vadd.f32 %v1608_v62, %v1573_v30 }
 0x1f7   : > { %v1613_v10 = vmul.f32 %v1611_v35, %v1609_v46 }
 0x1f9   : > { %v1614_v8 = vmax.f32 %v1613_v10, 0.0 }
 0x1fb   : > { %1615 = vst [vmem:[%s2711_s19] sm:$0xff] %v1614_v8 }
 0x1fc PF: > { %s1621_s18 = sand.u32 1, %s2570_s14   ;;  %s1971_s15 = sshll.u32 %s2422_s28, 2 }
 0x1fd   : > { %s4104_s26 = sld [smem:[#allocation103_spill]]  ;;  %s1653_s20 = sshll.u32 %s2709_s9, 4  ;;  %s1654_s20 = int_to_ptr.vmem [resolvable:$true] %s1653_s20 }
 0x1fe   : > { %s3648_s27 = scalar_lea.sflag [#allocation15], %s1621_s18 }
 0x203   : > { %s4105_s10 = smov %s4104_s26  ;;  %s1651_s13 = scalar_lea.hbm %s4104_s26, %s1971_s15 }
 0x204   : > { %s1655_s16 = sshll.u32 %s1651_s13, 4  ;;  %s2260_s17 = scalar_lea.hbm %s4105_s10, 8  ;;  %s1656_s16 = int_to_ptr.hbm [resolvable:$true] %s1655_s16 }
 0x205   : > { %s2254_s6 = sshra.s32 %s1656_s16, 4  ;;  %s2255_s6 = int_to_ptr.hbm [resolvable:$true] %s2254_s6 }
 0x206   : > { %s2256_s11 = scalar_lea.hbm %s2255_s6, 4  ;;  %p2261_p1 = scmp.lt.s32.totalorder %s2255_s6, %s4105_s10 }
 0x207   : > { %p2257_p11 = scmp.ne.s32.totalorder %s2255_s6, %s2256_s11  ;;  %p2262_p2 = scmp.lt.s32.totalorder %s2260_s17, %s2256_s11 }
 0x209   : > { %p2258_p13 = pnand %p2257_p11, %p2604_p12  ;;  %p2263_p5 = por %p2262_p2, %p2261_p1 }
 0x20b   : > { %p2259_p0 = pneg %p2258_p13 }
 0x20d   : > { %p2264_p8 = pnand %p2263_p5, %p2259_p0 }
 0x20f   : > { %2267 = shalt.err (!%p2264_p8)
}
 0x210   : > { %2000 = dma.vmem_to_hbm [thread:$0]  (%p2604_p12), %s1654_s20, 64, %s1656_s16, %s3648_s27  }
 0x211   : > { %s4106_s0 = sld [smem:[#allocation102_spill]]  ;;  %s1639_s13 = sshll.u32 %s2707_s4, 4  ;;  %s1640_s13 = int_to_ptr.vmem [resolvable:$true] %s1639_s13 }
 0x212   : > { %s1617_s6 = scalar_lea.sflag [#allocation6], %s2696_s12 }
 0x217   : > { %s1637_s26 = scalar_lea.hbm %s4106_s0, %s1971_s15  ;;  %s2288_s20 = scalar_lea.hbm %s4106_s0, 8 }
 0x218   : > { %s1641_s21 = sshll.u32 %s1637_s26, 4  ;;  %s1642_s21 = int_to_ptr.hbm [resolvable:$true] %s1641_s21 }
 0x219   : > { %s2282_s11 = sshra.s32 %s1642_s21, 4  ;;  %s2283_s11 = int_to_ptr.hbm [resolvable:$true] %s2282_s11 }
 0x21a   : > { %s2284_s14 = scalar_lea.hbm %s2283_s11, 4  ;;  %p2289_p6 = scmp.lt.s32.totalorder %s2283_s11, %s4106_s0 }
 0x21b   : > { %p2285_p9 = scmp.ne.s32.totalorder %s2283_s11, %s2284_s14  ;;  %p2290_p7 = scmp.lt.s32.totalorder %s2288_s20, %s2284_s14 }
 0x21d   : > { %p2286_p10 = pnand %p2285_p9, %p2604_p12  ;;  %p2291_p11 = por %p2290_p7, %p2289_p6 }
 0x21f   : > { %p2287_p3 = pneg %p2286_p10 }
 0x221   : > { %p2292_p13 = pnand %p2291_p11, %p2287_p3 }
 0x223   : > { %2295 = shalt.err (!%p2292_p13)
}
 0x224   : > { %1999 = dma.vmem_to_hbm [thread:$0]  (%p2604_p12), %s1640_s13, 64, %s1642_s21, %s1617_s6  }
 0x225   : > { %s1973_s12 = sshll.u32 %s2422_s28, 3  ;;  %s1667_s4 = sshll.u32 %s2711_s19, 4  ;;  %s1668_s4 = int_to_ptr.vmem [resolvable:$true] %s1667_s4 }
 0x226   : > { %s4107_s18 = sld [smem:[#allocation104_spill]] }
 0x22c   : > { %s1665_s26 = scalar_lea.hbm %s4107_s18, %s1973_s12  ;;  %s2316_s13 = scalar_lea.hbm %s4107_s18, 16 }
 0x22d   : > { %s1669_s17 = sshll.u32 %s1665_s26, 4  ;;  %s1670_s17 = int_to_ptr.hbm [resolvable:$true] %s1669_s17 }
 0x22e   : > { %s2310_s11 = sshra.s32 %s1670_s17, 4  ;;  %s2311_s11 = int_to_ptr.hbm [resolvable:$true] %s2310_s11 }
 0x22f   : > { %s2312_s14 = scalar_lea.hbm %s2311_s11, 8  ;;  %p2317_p5 = scmp.lt.s32.totalorder %s2311_s11, %s4107_s18 }
 0x230   : > { %p2313_p0 = scmp.ne.s32.totalorder %s2311_s11, %s2312_s14  ;;  %p2318_p8 = scmp.lt.s32.totalorder %s2316_s13, %s2312_s14 }
 0x232   : > { %p2314_p1 = pnand %p2313_p0, %p2604_p12  ;;  %p2319_p9 = por %p2318_p8, %p2317_p5 }
 0x234   : > { %p2315_p2 = pneg %p2314_p1 }
 0x236   : > { %p2320_p10 = pnand %p2319_p9, %p2315_p2 }
 0x238   : > { %2323 = shalt.err (!%p2320_p10)
}
 0x239   : > { %2001 = dma.vmem_to_hbm [thread:$0]  (%p2604_p12), %s1668_s4, 128, %s1670_s17, %s3648_s27  }
 0x23a PF: > { %s4108_s21 = sld [smem:[#allocation29_spill]] }
 0x23b   : > { %s4109_s6 = sld [smem:[#allocation26_spill]] }
 0x240   : > { %p2026_p3 = scmp.ge.s32.totalorder %s4108_s21, 2 }
 0x241   : > { %s1681_s23 = sand.u32 1, %s4109_s6  }
 0x242   : > { %p2013_p6 = pnand %p2026_p3, %p2620_p4  ;;  %s1682_s12 = scalar_lea.sflag [#allocation6], %s1681_s23 }
 0x244   : > { %p2014_p7 = pneg %p2013_p6 }
 0x246   : > { %2385 = dma.done.wait (%p2014_p7), %s1682_s12, 64  }
 0x247   : > { %2387 = vsyncadd (%p2014_p7), %s1682_s12, 4294967232  ;;  %s4111_s15 = sadd.s32 4294967294, %s4108_s21  }
 0x248   : > { %s1691_s9 = sand.u32 1, %s4111_s15  }
 0x249   : > { %s1692_s26 = scalar_lea.sflag [#allocation15], %s1691_s9 }
 0x24a   : > { %2389 = dma.done.wait (%p2014_p7), %s1692_s26, 192  }
 0x24b   : > { %2391 = vsyncadd (%p2014_p7), %s1692_s26, 4294967104  ;;  %s37_s13 = sadd.s32 1, %s4108_s21   ;;  %s4112_s24 = sld [smem:[#allocation27_spill]] }
 0x24c   : > { %p34_p12 = scmp.ge.s32.totalorder %s37_s13, 6   ;;  %s4113_s23 = sld [smem:[#allocation33_spill]] }
 0x24d   : > { %s4114_s27 = sld [smem:[#allocation28_spill]]  ;;  %s4118_s21 = smov %s2398_s22 }
 0x24e   : > { %s4115_s26 = sld [smem:[#allocation34_spill]]  ;;  %s4123_s28 = smov %s2430_s30 }
 0x24f   : > { %s4116_s4 = sld [smem:[#allocation30_spill]] }
 0x250   : > { %s4117_s17 = sld [smem:[#allocation31_spill]] }
 0x251   : > { %s4119_s22 = smov %s4112_s24  ;;  %s4120_s24 = smov %s2410_s25 }
 0x252   :  { %36 = sbr.rel (!%p34_p12) target bundleno = 24 (0x18), region = 177 }
 0x253   : > { %s4121_s25 = smov %s4114_s27  ;;  %s4122_s27 = smov %s2426_s29 }
 0x255   : > { %s4124_s29 = smov %s4116_s4 }
 0x256   : > { %s4125_s30 = smov %s4117_s17 }
 0x257   :  { %1708 = vsyncpa [#allocation5], 1 }
 0x258   :  { %1710 = vsyncpa [#allocation5 + $0x1], 1 }
 0x259   :  { %1711 = vsyncpa [#allocation9], 1 }
 0x25a   :  { %1713 = vsyncpa [#allocation9 + $0x1], 1 }
 0x25b   :  { %1714 = vsyncpa [#allocation6], 1 }
 0x25c   :  { %1716 = vsyncpa [#allocation6 + $0x1], 1 }
 0x25d   :  { %1717 = vsyncpa [#allocation15], 1 }
 0x25e   :  { %1719 = vsyncpa [#allocation15 + $0x1], 1 }
 0x25f   :  { %1720 = vsyncpa [#allocation7], 1 }
 0x260   :  { %1722 = vsyncpa [#allocation7 + $0x1], 1 }
 0x261   :  { %1723 = vsyncpa [#allocation12], 1 }

</bundles_post_ra>
